<compile_context>
chip_gen: v7x
topology: tpu7x:2x2x1
jax: 0.10.0
libtpu: 0.0.40
codegen_flags: <defaults>
</compile_context>

<pallas_src>
import numpy as np
import jax
import jax.numpy as jnp
from jax.experimental import pallas as pl
from jax.experimental.pallas import tpu as pltpu

BN_EPS = 1e-5


# ---------------------------------------------------------------------------
# Small helpers
# ---------------------------------------------------------------------------
def _cdiv(a, b):
    return -(-a // b)


def _fold_bn(gamma, beta, mean, var):
    scale = gamma / jnp.sqrt(var + BN_EPS)
    bias = beta - mean * scale
    return scale.astype(jnp.float32), bias.astype(jnp.float32)


def _vmem_tile_bytes(shape, dtype):
    """VMEM footprint estimate with native (sublane,128)-tiled layout on last 2 dims."""
    itemsize = jnp.dtype(dtype).itemsize
    sub = 32 // itemsize
    shape = (1,) * max(0, 2 - len(shape)) + tuple(shape)
    lead = 1
    for d in shape[:-2]:
        lead *= d
    rows = _cdiv(shape[-2], sub) * sub
    cols = _cdiv(shape[-1], 128) * 128
    return lead * rows * cols * itemsize


def _vmem_budgets():
    """Per-generation VMEM sizing: ~128 MiB on v5e/v6e, 64 MiB per core on v7x."""
    vmem_cap = 64 * 1024 * 1024                     # conservative default (v7x per-core)
    try:
        info = pltpu.get_tpu_info()
        cap = int(getattr(info, "vmem_capacity_bytes", 0) or 0)
        if cap > 0:
            vmem_cap = cap
    except Exception:
        pass
    vmem_limit = min((vmem_cap * 3) // 4, 100 * 1024 * 1024)   # scoped-VMEM ceiling
    tile_budget = min((vmem_cap * 2) // 5, 48 * 1024 * 1024)   # working-set budget
    return tile_budget, vmem_limit


def _pick_images_per_tile(b2, per_img_bytes, budget_bytes):
    cap = max(1, min(b2, budget_bytes // max(per_img_bytes, 1)))
    # Prefer a bimg that (a) fits the budget, (b) divides the batch exactly (no padded
    # images / wasted compute), and (c) yields an even number of grid steps so megacore
    # parts (v7x: 2 TensorCores) shard the "parallel" grid axis across both cores.
    for bimg in range(cap, 0, -1):
        if b2 % bimg == 0 and (b2 // bimg) % 2 == 0:
            return bimg
    for bimg in range(cap, 0, -1):
        if b2 % bimg == 0:
            return bimg
    return cap


# ---------------------------------------------------------------------------
# Banded weight construction (BN + shortcut folded, f32 fold, single bf16 cast)
# ---------------------------------------------------------------------------
def _build_block0_band(blk, w_in, wo, stride, fdim):
    """Block-1 branch conv (stride folded into the band) + folded projection shortcut.

    band[kh] : (wp*cin, wo*fdim), row = padded_col*cin + c, col = out_col*fdim + f.
    """
    cin = blk['w_br'].shape[2]
    wp = w_in + 2
    w_eff = (blk['w_br'] * blk['br_s']).astype(jnp.float32)          # (3,3,cin,fdim)
    bias = blk['br_b']
    band = jnp.zeros((3, wp, cin, wo, fdim), jnp.float32)
    jj = np.arange(wo)
    for kh in range(3):
        for kw in range(3):
            cols = stride * jj + kw                                   # padded input column
            band = band.at[kh, cols, :, jj, :].add(
                jnp.broadcast_to(w_eff[kh, kw], (wo, cin, fdim)))
    cols_c = stride * jj + 1                                          # center column
    if blk['has_shortcut']:
        wsc_eff = (blk['w_sc'] * blk['sc_s']).astype(jnp.float32)     # (cin, fdim)
        bias = bias + blk['sc_b']
        band = band.at[1, cols_c, :, jj, :].add(
            jnp.broadcast_to(wsc_eff, (wo, cin, fdim)))
    else:                                                             # identity (cin==fdim, s==1)
        band = band.at[1, cols_c, :, jj, :].add(
            jnp.broadcast_to(jnp.eye(fdim, dtype=jnp.float32), (wo, fdim, fdim)))
    band = band.reshape(3, wp * cin, wo * fdim).astype(jnp.bfloat16)
    bias = jnp.tile(bias.reshape(1, fdim), (1, wo)).astype(jnp.float32)
    return band, bias


def _build_inner_band(blk, wo, fdim):
    """Inner-block branch conv (stride 1, cin == fdim, identity shortcut added in-kernel)."""
    cin = blk['w_br'].shape[2]
    assert cin == fdim and blk['stride'] == 1 and not blk['has_shortcut']
    w_eff = (blk['w_br'] * blk['br_s']).astype(jnp.float32)
    band = jnp.zeros((3, wo, cin, wo, fdim), jnp.float32)
    jj = np.arange(wo)
    for kh in range(3):
        for kw in range(3):
            cols = jj + kw - 1
            m = (cols >= 0) & (cols < wo)
            jv, cv = jj[m], cols[m]
            if jv.size == 0:
                continue
            band = band.at[kh, cv, :, jv, :].add(
                jnp.broadcast_to(w_eff[kh, kw], (int(jv.size), cin, fdim)))
    band = band.reshape(3, wo * cin, wo * fdim).astype(jnp.bfloat16)
    bias = jnp.tile(blk['br_b'].reshape(1, fdim), (1, wo)).astype(jnp.float32)
    return band, bias


# ---------------------------------------------------------------------------
# Fused-stage Pallas kernel
# ---------------------------------------------------------------------------
def _make_stage_kernel(num_blocks, bimg, ho, no, k0, planes):
    mo = bimg * ho

    def kernel(*refs):
        x_ref = refs[0]
        wrefs = refs[1:1 + 2 * num_blocks]
        o_ref = refs[1 + 2 * num_blocks]
        scratches = refs[2 + 2 * num_blocks:]

        # Zero ONLY the two halo rows of each scratch (interior is overwritten per block).
        for s in scratches:
            s[:, pl.ds(0, 1), :] = jnp.zeros((bimg, 1, no), s.dtype)
            s[:, pl.ds(ho + 1, 1), :] = jnp.zeros((bimg, 1, no), s.dtype)

        # ---- block 1: banded conv (stride + projection shortcut folded into bands) ----
        wb0, b0 = wrefs[0], wrefs[1]

        def row0(kh):
            p, off = (kh % 2, kh // 2) if planes == 2 else (0, kh)
            return x_ref[p, :, pl.ds(off, ho), :].reshape(mo, k0)

        acc = jnp.dot(row0(0), wb0[0], preferred_element_type=jnp.float32)
        acc = acc + jnp.dot(row0(1), wb0[1], preferred_element_type=jnp.float32)
        acc = acc + jnp.dot(row0(2), wb0[2], preferred_element_type=jnp.float32)
        cur = jnp.maximum(acc + b0[...], 0.0)                          # (mo, no) f32

        # ---- blocks 2..N: identity shortcut, lane-dense activations resident in VMEM ---
        for b in range(1, num_blocks):
            dst = scratches[(b - 1) % len(scratches)]
            mid = cur.astype(dst.dtype)                                # bf16 block input
            dst[:, pl.ds(1, ho), :] = mid.reshape(bimg, ho, no)        # aligned interior store
            wbb, bb = wrefs[2 * b], wrefs[2 * b + 1]
            top = dst[:, pl.ds(0, ho), :].reshape(mo, no)
            bot = dst[:, pl.ds(2, ho), :].reshape(mo, no)
            acc = jnp.dot(top, wbb[0], preferred_element_type=jnp.float32)
            acc = acc + jnp.dot(mid, wbb[1], preferred_element_type=jnp.float32)
            acc = acc + jnp.dot(bot, wbb[2], preferred_element_type=jnp.float32)
            cur = jnp.maximum(acc + mid.astype(jnp.float32) + bb[...], 0.0)

        o_ref[...] = cur.reshape(bimg, ho, no).astype(o_ref.dtype)     # lane-dense output

    return kernel


# ---------------------------------------------------------------------------
# Forward pass (wrapper: layout plumbing only, all compute is in the kernel)
# ---------------------------------------------------------------------------
def base3d_res_stage_forward(x_ncthw, params):
    """Pallas-backed forward of the whole stage (all blocks fused).  NCTHW in/out."""
    n, c_in, t, h, w = x_ncthw.shape
    fdim = params[0]['w_br'].shape[3]
    num_blocks = len(params)
    s0 = params[0]['stride']
    assert s0 in (1, 2)
    for blk in params[1:]:
        assert blk['stride'] == 1 and not blk['has_shortcut'] \
            and blk['w_br'].shape[2] == fdim

    ho = (h - 1) // s0 + 1
    wo = (w - 1) // s0 + 1
    wp = w + 2
    planes = s0                              # 2 row-parity planes when stride 2, else 1
    hpl = _cdiv(h + 2, s0)                   # rows per parity plane
    hp2 = planes * hpl
    b2 = n * t
    no = wo * fdim                           # lane-dense activation width (=128 here)
    k0 = wp * c_in                           # block-1 matmul K

    # ---- fold BN + shortcut into banded weight matrices -----------------------------
    bands = [_build_block0_band(params[0], w, wo, s0, fdim)]
    bands += [_build_inner_band(blk, wo, fdim) for blk in params[1:]]

    # ---- VMEM-aware tile sizing ------------------------------------------------------
    tile_budget, vmem_limit = _vmem_budgets()
    n_scr = min(2, num_blocks - 1)
    fixed = sum(2 * _vmem_tile_bytes(bd.shape, jnp.bfloat16)
                + 2 * _vmem_tile_bytes(bs.shape, jnp.float32) for bd, bs in bands)
    per_img = (2 * _vmem_tile_bytes((planes, 1, hpl, k0), jnp.bfloat16)   # dbuf input
               + 2 * _vmem_tile_bytes((1, ho, no), jnp.bfloat16)          # dbuf output
               + n_scr * _vmem_tile_bytes((1, ho + 2, no), jnp.bfloat16)  # resident acts
               + 4 * _vmem_tile_bytes((ho, no), jnp.float32))             # live f32 slack
    bimg = _pick_images_per_tile(b2, per_img, max(tile_budget - fixed, per_img))
    grid_n = _cdiv(b2, bimg)
    b2p = grid_n * bimg

    # ---- input: bf16 cast + ONE pad + ONE transpose (parity split fused into it) ------
    xb = x_ncthw.astype(jnp.bfloat16)
    xb = jnp.pad(xb, ((0, 0), (0, 0), (0, 0), (1, hp2 - h - 1), (1, 1)))
    xb = xb.reshape(n, c_in, t, hpl, planes, wp)
    xb = jnp.transpose(xb, (4, 0, 2, 3, 5, 1)).reshape(planes, b2, hpl, k0)
    if b2p != b2:
        xb = jnp.pad(xb, ((0, 0), (0, b2p - b2), (0, 0), (0, 0)))

    in_specs = [pl.BlockSpec((planes, bimg, hpl, k0), lambda i: (0, i, 0, 0))]
    operands = [xb]
    for bd, bs in bands:
        operands += [bd, bs]
        in_specs += [pl.BlockSpec(bd.shape, lambda i: (0, 0, 0)),
                     pl.BlockSpec(bs.shape, lambda i: (0, 0))]

    kernel = _make_stage_kernel(num_blocks, bimg, ho, no, k0, planes)
    out = pl.pallas_call(
        kernel,
        out_shape=jax.ShapeDtypeStruct((b2p, ho, no), jnp.bfloat16),
        grid_spec=pltpu.PrefetchScalarGridSpec(
            num_scalar_prefetch=0,
            grid=(grid_n,),
            in_specs=in_specs,
            out_specs=pl.BlockSpec((bimg, ho, no), lambda i: (i, 0, 0)),
            scratch_shapes=[pltpu.VMEM((bimg, ho + 2, no), jnp.bfloat16)
                            for _ in range(n_scr)]),
        compiler_params=pltpu.CompilerParams(
            dimension_semantics=("parallel",),
            vmem_limit_bytes=vmem_limit),
    )(*operands)

    out = out.reshape(b2p, ho, wo, fdim)[:b2].reshape(n, t, ho, wo, fdim)
    return jnp.transpose(out, (0, 4, 1, 2, 3)).astype(jnp.float32)      # back to NCTHW


# ---------------------------------------------------------------------------
# Parameters (deterministic, synthetic) and pure-JAX reference
# ---------------------------------------------------------------------------
def init_stage_params(key, dim_in, num_filters, num_blocks):
    params = []
    cin = dim_in
    for b in range(num_blocks):
        key, *ks = jax.random.split(key, 11)
        downsampling = (b == 0)             # Base3DResStage: only res_1 keeps cfg.DOWNSAMPLING
        stride = 2 if downsampling else 1   # DOWNSAMPLING_TEMPORAL=False -> temporal stride 1
        has_shortcut = (cin != num_filters) or downsampling

        w_br = 0.1 * jax.random.normal(ks[0], (3, 3, cin, num_filters), jnp.float32)
        g = 1.0 + 0.1 * jax.random.normal(ks[1], (num_filters,), jnp.float32)
        bta = 0.1 * jax.random.normal(ks[2], (num_filters,), jnp.float32)
        mu = 0.1 * jax.random.normal(ks[3], (num_filters,), jnp.float32)
        var = 0.5 + 0.1 * jnp.abs(jax.random.normal(ks[4], (num_filters,), jnp.float32))
        br_s, br_b = _fold_bn(g, bta, mu, var)
        blk = dict(stride=stride, has_shortcut=has_shortcut,
                   w_br=w_br, br_s=br_s, br_b=br_b)

        if has_shortcut:
            w_sc = 0.1 * jax.random.normal(ks[5], (cin, num_filters), jnp.float32)
            g2 = 1.0 + 0.1 * jax.random.normal(ks[6], (num_filters,), jnp.float32)
            b2 = 0.1 * jax.random.normal(ks[7], (num_filters,), jnp.float32)
            m2 = 0.1 * jax.random.normal(ks[8], (num_filters,), jnp.float32)
            v2 = 0.5 + 0.1 * jnp.abs(jax.random.normal(ks[9], (num_filters,), jnp.float32))
            sc_s, sc_b = _fold_bn(g2, b2, m2, v2)
            blk.update(w_sc=w_sc, sc_s=sc_s, sc_b=sc_b)

        params.append(blk)
        cin = num_filters
    return params


def reference_forward(x_ncthw, params):
    """Pure-JAX (lax.conv) reference.  BN applied UNFOLDED (conv * scale + bias) so the
    kernel-side weight folding is validated; weights and inter-block activations are
    rounded to bf16 like the kernel's storage so the comparison tolerance stays tight."""
    n, c, t, h, w = x_ncthw.shape
    x = jnp.transpose(x_ncthw, (0, 2, 3, 4, 1)).reshape(n * t, h, w, c)
    x = x.astype(jnp.bfloat16).astype(jnp.float32)
    for blk in params:
        s = blk['stride']
        w_br = blk['w_br'].astype(jnp.bfloat16).astype(jnp.float32)
        br = jax.lax.conv_general_dilated(
            x, w_br, window_strides=(s, s), padding=((1, 1), (1, 1)),
            dimension_numbers=('NHWC', 'HWIO', 'NHWC'))
        br = br * blk['br_s'] + blk['br_b']
        if blk['has_shortcut']:
            w_sc = blk['w_sc'].astype(jnp.bfloat16).astype(jnp.float32)
            sc = jnp.einsum('bhwc,cf->bhwf', x[:, ::s, ::s, :], w_sc)
            sc = sc * blk['sc_s'] + blk['sc_b']
        else:
            sc = x
        x = jnp.maximum(br + sc, 0.0)
        x = x.astype(jnp.bfloat16).astype(jnp.float32)   # kernel stores activations as bf16
    _, ho, wo, f = x.shape
    return jnp.transpose(x.reshape(n, t, ho, wo, f), (0, 4, 1, 2, 3))


# ---------------------------------------------------------------------------
if __name__ == "__main__":
    # Config consistent with the module: NUM_BLOCKS=3, DIM_IN=8, NUM_FILTERS=16,
    # KERNEL_SIZE=[1,3,3], DOWNSAMPLING=True (first block only), DOWNSAMPLING_TEMPORAL=False.
    N, C_IN, T, H, W = 2, 8, 4, 16, 16
    NUM_FILTERS, NUM_BLOCKS = 16, 3

    key = jax.random.PRNGKey(0)
    k_x, k_p = jax.random.split(key)
    x = jax.random.normal(k_x, (N, C_IN, T, H, W), jnp.float32)   # PyTorch NCTHW layout
    params = init_stage_params(k_p, C_IN, NUM_FILTERS, NUM_BLOCKS)

    out = jax.block_until_ready(base3d_res_stage_forward(x, params))
    assert out.shape == (N, NUM_FILTERS, T, H // 2, W // 2), out.shape

    ref = jax.block_until_ready(reference_forward(x, params))
    # bf16 weight-fold rounding + bf16 activation storage account for < ~5e-2 abs error;
    # any semantic bug (missing bias/scale, wrong band/stride) is >= ~3e-1.
    err = float(jnp.max(jnp.abs(out - ref)))
    if err > 1e-1:
        raise AssertionError(f"Pallas output mismatch vs reference, max abs err = {err}")
    print("KERNEL_OK")
</pallas_src>

<mosaic_0001>
module attributes {stable_mosaic.version = 11 : i64} {
  func.func @kernel(%arg0: i32, %arg1: memref<2x4x9x144xbf16, #tpu.memory_space<vmem>>, %arg2: memref<3x144x128xbf16, #tpu.memory_space<vmem>>, %arg3: memref<1x128xf32, #tpu.memory_space<vmem>>, %arg4: memref<3x128x128xbf16, #tpu.memory_space<vmem>>, %arg5: memref<1x128xf32, #tpu.memory_space<vmem>>, %arg6: memref<3x128x128xbf16, #tpu.memory_space<vmem>>, %arg7: memref<1x128xf32, #tpu.memory_space<vmem>>, %arg8: memref<4x8x128xbf16, #tpu.memory_space<vmem>>, %arg9: memref<4x10x128xbf16, #tpu.memory_space<vmem>>, %arg10: memref<4x10x128xbf16, #tpu.memory_space<vmem>>) attributes {dimension_semantics = [#tpu.dimension_semantics<parallel>], iteration_bounds = array<i64: 2>, scalar_prefetch = 0 : i64, scratch_operands = 2 : i64, tpu.core_type = #tpu.core_type<tc>, window_params = [{transform_indices = @transform_0, window_bounds = array<i64: 2, 4, 9, 144>}, {pipeline_mode = #tpu.pipeline_mode<synchronous>, transform_indices = @transform_1, window_bounds = array<i64: 3, 144, 128>}, {pipeline_mode = #tpu.pipeline_mode<synchronous>, transform_indices = @transform_2, window_bounds = array<i64: 1, 128>}, {pipeline_mode = #tpu.pipeline_mode<synchronous>, transform_indices = @transform_3, window_bounds = array<i64: 3, 128, 128>}, {pipeline_mode = #tpu.pipeline_mode<synchronous>, transform_indices = @transform_4, window_bounds = array<i64: 1, 128>}, {pipeline_mode = #tpu.pipeline_mode<synchronous>, transform_indices = @transform_5, window_bounds = array<i64: 3, 128, 128>}, {pipeline_mode = #tpu.pipeline_mode<synchronous>, transform_indices = @transform_6, window_bounds = array<i64: 1, 128>}, {transform_indices = @transform_7, window_bounds = array<i64: 4, 8, 128>}]} {
    %cst = arith.constant 0.000000e+00 : bf16
    %0 = vector.broadcast %cst : bf16 to vector<4x1x128xbf16>
    %c0 = arith.constant 0 : index
    %c0_0 = arith.constant 0 : index
    %c0_1 = arith.constant 0 : index
    %1 = vector.load %arg9[%c0, %c0_0, %c0_1] : memref<4x10x128xbf16, #tpu.memory_space<vmem>>, vector<4x1x128xbf16>
    tpu.vector_store %arg9[%c0, %c0_0, %c0_1], %0 {strides = array<i32>} : memref<4x10x128xbf16, #tpu.memory_space<vmem>>, vector<4x1x128xbf16>,
    %cst_2 = arith.constant 0.000000e+00 : bf16
    %2 = vector.broadcast %cst_2 : bf16 to vector<4x1x128xbf16>
    %c0_3 = arith.constant 0 : index
    %c9 = arith.constant 9 : index
    %c0_4 = arith.constant 0 : index
    %3 = vector.load %arg9[%c0_3, %c9, %c0_4] : memref<4x10x128xbf16, #tpu.memory_space<vmem>>, vector<4x1x128xbf16>
    tpu.vector_store %arg9[%c0_3, %c9, %c0_4], %2 {strides = array<i32>} : memref<4x10x128xbf16, #tpu.memory_space<vmem>>, vector<4x1x128xbf16>,
    %cst_5 = arith.constant 0.000000e+00 : bf16
    %4 = vector.broadcast %cst_5 : bf16 to vector<4x1x128xbf16>
    %c0_6 = arith.constant 0 : index
    %c0_7 = arith.constant 0 : index
    %c0_8 = arith.constant 0 : index
    %5 = vector.load %arg10[%c0_6, %c0_7, %c0_8] : memref<4x10x128xbf16, #tpu.memory_space<vmem>>, vector<4x1x128xbf16>
    tpu.vector_store %arg10[%c0_6, %c0_7, %c0_8], %4 {strides = array<i32>} : memref<4x10x128xbf16, #tpu.memory_space<vmem>>, vector<4x1x128xbf16>,
    %cst_9 = arith.constant 0.000000e+00 : bf16
    %6 = vector.broadcast %cst_9 : bf16 to vector<4x1x128xbf16>
    %c0_10 = arith.constant 0 : index
    %c9_11 = arith.constant 9 : index
    %c0_12 = arith.constant 0 : index
    %7 = vector.load %arg10[%c0_10, %c9_11, %c0_12] : memref<4x10x128xbf16, #tpu.memory_space<vmem>>, vector<4x1x128xbf16>
    tpu.vector_store %arg10[%c0_10, %c9_11, %c0_12], %6 {strides = array<i32>} : memref<4x10x128xbf16, #tpu.memory_space<vmem>>, vector<4x1x128xbf16>,
    %c0_13 = arith.constant 0 : index
    %c0_14 = arith.constant 0 : index
    %c0_15 = arith.constant 0 : index
    %c0_16 = arith.constant 0 : index
    %8 = vector.load %arg1[%c0_13, %c0_14, %c0_15, %c0_16] : memref<2x4x9x144xbf16, #tpu.memory_space<vmem>>, vector<1x4x8x144xbf16>
    %9 = vector.shape_cast %8 : vector<1x4x8x144xbf16> to vector<4x8x144xbf16>
    %10 = vector.shape_cast %9 : vector<4x8x144xbf16> to vector<32x144xbf16>
    %c0_17 = arith.constant 0 : index
    %c0_18 = arith.constant 0 : index
    %c0_19 = arith.constant 0 : index
    %11 = vector.load %arg2[%c0_17, %c0_18, %c0_19] : memref<3x144x128xbf16, #tpu.memory_space<vmem>>, vector<1x144x128xbf16>
    %12 = vector.shape_cast %11 : vector<1x144x128xbf16> to vector<144x128xbf16>
    %cst_20 = arith.constant dense<0.000000e+00> : vector<32x128xf32>
    %13 = tpu.matmul %10, %12, %cst_20 {dimension_numbers = #tpu.dot_dimension_numbers<[1], [0], [0], [1], [0, 0, 1, 1], [], []>} : vector<32x144xbf16>, vector<144x128xbf16>, vector<32x128xf32> -> vector<32x128xf32>
    %c1 = arith.constant 1 : index
    %c0_21 = arith.constant 0 : index
    %c0_22 = arith.constant 0 : index
    %c0_23 = arith.constant 0 : index
    %14 = vector.load %arg1[%c1, %c0_21, %c0_22, %c0_23] : memref<2x4x9x144xbf16, #tpu.memory_space<vmem>>, vector<1x4x8x144xbf16>
    %15 = vector.shape_cast %14 : vector<1x4x8x144xbf16> to vector<4x8x144xbf16>
    %16 = vector.shape_cast %15 : vector<4x8x144xbf16> to vector<32x144xbf16>
    %c1_24 = arith.constant 1 : index
    %c0_25 = arith.constant 0 : index
    %c0_26 = arith.constant 0 : index
    %17 = vector.load %arg2[%c1_24, %c0_25, %c0_26] : memref<3x144x128xbf16, #tpu.memory_space<vmem>>, vector<1x144x128xbf16>
    %18 = vector.shape_cast %17 : vector<1x144x128xbf16> to vector<144x128xbf16>
    %cst_27 = arith.constant dense<0.000000e+00> : vector<32x128xf32>
    %19 = tpu.matmul %16, %18, %cst_27 {dimension_numbers = #tpu.dot_dimension_numbers<[1], [0], [0], [1], [0, 0, 1, 1], [], []>} : vector<32x144xbf16>, vector<144x128xbf16>, vector<32x128xf32> -> vector<32x128xf32>
    %20 = arith.addf %13, %19 : vector<32x128xf32>
    %c0_28 = arith.constant 0 : index
    %c0_29 = arith.constant 0 : index
    %c1_30 = arith.constant 1 : index
    %c0_31 = arith.constant 0 : index
    %21 = vector.load %arg1[%c0_28, %c0_29, %c1_30, %c0_31] : memref<2x4x9x144xbf16, #tpu.memory_space<vmem>>, vector<1x4x8x144xbf16>
    %22 = vector.shape_cast %21 : vector<1x4x8x144xbf16> to vector<4x8x144xbf16>
    %23 = vector.shape_cast %22 : vector<4x8x144xbf16> to vector<32x144xbf16>
    %c2 = arith.constant 2 : index
    %c0_32 = arith.constant 0 : index
    %c0_33 = arith.constant 0 : index
    %24 = vector.load %arg2[%c2, %c0_32, %c0_33] : memref<3x144x128xbf16, #tpu.memory_space<vmem>>, vector<1x144x128xbf16>
    %25 = vector.shape_cast %24 : vector<1x144x128xbf16> to vector<144x128xbf16>
    %cst_34 = arith.constant dense<0.000000e+00> : vector<32x128xf32>
    %26 = tpu.matmul %23, %25, %cst_34 {dimension_numbers = #tpu.dot_dimension_numbers<[1], [0], [0], [1], [0, 0, 1, 1], [], []>} : vector<32x144xbf16>, vector<144x128xbf16>, vector<32x128xf32> -> vector<32x128xf32>
    %27 = arith.addf %20, %26 : vector<32x128xf32>
    %c0_35 = arith.constant 0 : index
    %c0_36 = arith.constant 0 : index
    %28 = vector.load %arg3[%c0_35, %c0_36] : memref<1x128xf32, #tpu.memory_space<vmem>>, vector<1x128xf32>
    %29 = vector.broadcast %28 : vector<1x128xf32> to vector<32x128xf32>
    %30 = arith.addf %27, %29 : vector<32x128xf32>
    %cst_37 = arith.constant 0.000000e+00 : f32
    %31 = vector.broadcast %cst_37 : f32 to vector<32x128xf32>
    %32 = arith.maximumf %30, %31 : vector<32x128xf32>
    %33 = arith.truncf %32 : vector<32x128xf32> to vector<32x128xbf16>
    %34 = vector.shape_cast %33 : vector<32x128xbf16> to vector<4x8x128xbf16>
    %c0_38 = arith.constant 0 : index
    %c1_39 = arith.constant 1 : index
    %c0_40 = arith.constant 0 : index
    %35 = vector.load %arg9[%c0_38, %c1_39, %c0_40] : memref<4x10x128xbf16, #tpu.memory_space<vmem>>, vector<4x8x128xbf16>
    tpu.vector_store %arg9[%c0_38, %c1_39, %c0_40], %34 {strides = array<i32>} : memref<4x10x128xbf16, #tpu.memory_space<vmem>>, vector<4x8x128xbf16>,
    %c0_41 = arith.constant 0 : index
    %c0_42 = arith.constant 0 : index
    %c0_43 = arith.constant 0 : index
    %36 = vector.load %arg9[%c0_41, %c0_42, %c0_43] : memref<4x10x128xbf16, #tpu.memory_space<vmem>>, vector<4x8x128xbf16>
    %37 = vector.shape_cast %36 : vector<4x8x128xbf16> to vector<32x128xbf16>
    %c0_44 = arith.constant 0 : index
    %c2_45 = arith.constant 2 : index
    %c0_46 = arith.constant 0 : index
    %38 = vector.load %arg9[%c0_44, %c2_45, %c0_46] : memref<4x10x128xbf16, #tpu.memory_space<vmem>>, vector<4x8x128xbf16>
    %39 = vector.shape_cast %38 : vector<4x8x128xbf16> to vector<32x128xbf16>
    %c0_47 = arith.constant 0 : index
    %c0_48 = arith.constant 0 : index
    %c0_49 = arith.constant 0 : index
    %40 = vector.load %arg4[%c0_47, %c0_48, %c0_49] : memref<3x128x128xbf16, #tpu.memory_space<vmem>>, vector<1x128x128xbf16>
    %41 = vector.shape_cast %40 : vector<1x128x128xbf16> to vector<128x128xbf16>
    %cst_50 = arith.constant dense<0.000000e+00> : vector<32x128xf32>
    %42 = tpu.matmul %37, %41, %cst_50 {dimension_numbers = #tpu.dot_dimension_numbers<[1], [0], [0], [1], [0, 0, 1, 1], [], []>} : vector<32x128xbf16>, vector<128x128xbf16>, vector<32x128xf32> -> vector<32x128xf32>
    %c1_51 = arith.constant 1 : index
    %c0_52 = arith.constant 0 : index
    %c0_53 = arith.constant 0 : index
    %43 = vector.load %arg4[%c1_51, %c0_52, %c0_53] : memref<3x128x128xbf16, #tpu.memory_space<vmem>>, vector<1x128x128xbf16>
    %44 = vector.shape_cast %43 : vector<1x128x128xbf16> to vector<128x128xbf16>
    %cst_54 = arith.constant dense<0.000000e+00> : vector<32x128xf32>
    %45 = tpu.matmul %33, %44, %cst_54 {dimension_numbers = #tpu.dot_dimension_numbers<[1], [0], [0], [1], [0, 0, 1, 1], [], []>} : vector<32x128xbf16>, vector<128x128xbf16>, vector<32x128xf32> -> vector<32x128xf32>
    %46 = arith.addf %42, %45 : vector<32x128xf32>
    %c2_55 = arith.constant 2 : index
    %c0_56 = arith.constant 0 : index
    %c0_57 = arith.constant 0 : index
    %47 = vector.load %arg4[%c2_55, %c0_56, %c0_57] : memref<3x128x128xbf16, #tpu.memory_space<vmem>>, vector<1x128x128xbf16>
    %48 = vector.shape_cast %47 : vector<1x128x128xbf16> to vector<128x128xbf16>
    %cst_58 = arith.constant dense<0.000000e+00> : vector<32x128xf32>
    %49 = tpu.matmul %39, %48, %cst_58 {dimension_numbers = #tpu.dot_dimension_numbers<[1], [0], [0], [1], [0, 0, 1, 1], [], []>} : vector<32x128xbf16>, vector<128x128xbf16>, vector<32x128xf32> -> vector<32x128xf32>
    %50 = arith.addf %46, %49 : vector<32x128xf32>
    %51 = arith.extf %33 : vector<32x128xbf16> to vector<32x128xf32>
    %52 = arith.addf %50, %51 : vector<32x128xf32>
    %c0_59 = arith.constant 0 : index
    %c0_60 = arith.constant 0 : index
    %53 = vector.load %arg5[%c0_59, %c0_60] : memref<1x128xf32, #tpu.memory_space<vmem>>, vector<1x128xf32>
    %54 = vector.broadcast %53 : vector<1x128xf32> to vector<32x128xf32>
    %55 = arith.addf %52, %54 : vector<32x128xf32>
    %cst_61 = arith.constant 0.000000e+00 : f32
    %56 = vector.broadcast %cst_61 : f32 to vector<32x128xf32>
    %57 = arith.maximumf %55, %56 : vector<32x128xf32>
    %58 = arith.truncf %57 : vector<32x128xf32> to vector<32x128xbf16>
    %59 = vector.shape_cast %58 : vector<32x128xbf16> to vector<4x8x128xbf16>
    %c0_62 = arith.constant 0 : index
    %c1_63 = arith.constant 1 : index
    %c0_64 = arith.constant 0 : index
    %60 = vector.load %arg10[%c0_62, %c1_63, %c0_64] : memref<4x10x128xbf16, #tpu.memory_space<vmem>>, vector<4x8x128xbf16>
    tpu.vector_store %arg10[%c0_62, %c1_63, %c0_64], %59 {strides = array<i32>} : memref<4x10x128xbf16, #tpu.memory_space<vmem>>, vector<4x8x128xbf16>,
    %c0_65 = arith.constant 0 : index
    %c0_66 = arith.constant 0 : index
    %c0_67 = arith.constant 0 : index
    %61 = vector.load %arg10[%c0_65, %c0_66, %c0_67] : memref<4x10x128xbf16, #tpu.memory_space<vmem>>, vector<4x8x128xbf16>
    %62 = vector.shape_cast %61 : vector<4x8x128xbf16> to vector<32x128xbf16>
    %c0_68 = arith.constant 0 : index
    %c2_69 = arith.constant 2 : index
    %c0_70 = arith.constant 0 : index
    %63 = vector.load %arg10[%c0_68, %c2_69, %c0_70] : memref<4x10x128xbf16, #tpu.memory_space<vmem>>, vector<4x8x128xbf16>
    %64 = vector.shape_cast %63 : vector<4x8x128xbf16> to vector<32x128xbf16>
    %c0_71 = arith.constant 0 : index
    %c0_72 = arith.constant 0 : index
    %c0_73 = arith.constant 0 : index
    %65 = vector.load %arg6[%c0_71, %c0_72, %c0_73] : memref<3x128x128xbf16, #tpu.memory_space<vmem>>, vector<1x128x128xbf16>
    %66 = vector.shape_cast %65 : vector<1x128x128xbf16> to vector<128x128xbf16>
    %cst_74 = arith.constant dense<0.000000e+00> : vector<32x128xf32>
    %67 = tpu.matmul %62, %66, %cst_74 {dimension_numbers = #tpu.dot_dimension_numbers<[1], [0], [0], [1], [0, 0, 1, 1], [], []>} : vector<32x128xbf16>, vector<128x128xbf16>, vector<32x128xf32> -> vector<32x128xf32>
    %c1_75 = arith.constant 1 : index
    %c0_76 = arith.constant 0 : index
    %c0_77 = arith.constant 0 : index
    %68 = vector.load %arg6[%c1_75, %c0_76, %c0_77] : memref<3x128x128xbf16, #tpu.memory_space<vmem>>, vector<1x128x128xbf16>
    %69 = vector.shape_cast %68 : vector<1x128x128xbf16> to vector<128x128xbf16>
    %cst_78 = arith.constant dense<0.000000e+00> : vector<32x128xf32>
    %70 = tpu.matmul %58, %69, %cst_78 {dimension_numbers = #tpu.dot_dimension_numbers<[1], [0], [0], [1], [0, 0, 1, 1], [], []>} : vector<32x128xbf16>, vector<128x128xbf16>, vector<32x128xf32> -> vector<32x128xf32>
    %71 = arith.addf %67, %70 : vector<32x128xf32>
    %c2_79 = arith.constant 2 : index
    %c0_80 = arith.constant 0 : index
    %c0_81 = arith.constant 0 : index
    %72 = vector.load %arg6[%c2_79, %c0_80, %c0_81] : memref<3x128x128xbf16, #tpu.memory_space<vmem>>, vector<1x128x128xbf16>
    %73 = vector.shape_cast %72 : vector<1x128x128xbf16> to vector<128x128xbf16>
    %cst_82 = arith.constant dense<0.000000e+00> : vector<32x128xf32>
    %74 = tpu.matmul %64, %73, %cst_82 {dimension_numbers = #tpu.dot_dimension_numbers<[1], [0], [0], [1], [0, 0, 1, 1], [], []>} : vector<32x128xbf16>, vector<128x128xbf16>, vector<32x128xf32> -> vector<32x128xf32>
    %75 = arith.addf %71, %74 : vector<32x128xf32>
    %76 = arith.extf %58 : vector<32x128xbf16> to vector<32x128xf32>
    %77 = arith.addf %75, %76 : vector<32x128xf32>
    %c0_83 = arith.constant 0 : index
    %c0_84 = arith.constant 0 : index
    %78 = vector.load %arg7[%c0_83, %c0_84] : memref<1x128xf32, #tpu.memory_space<vmem>>, vector<1x128xf32>
    %79 = vector.broadcast %78 : vector<1x128xf32> to vector<32x128xf32>
    %80 = arith.addf %77, %79 : vector<32x128xf32>
    %cst_85 = arith.constant 0.000000e+00 : f32
    %81 = vector.broadcast %cst_85 : f32 to vector<32x128xf32>
    %82 = arith.maximumf %80, %81 : vector<32x128xf32>
    %83 = vector.shape_cast %82 : vector<32x128xf32> to vector<4x8x128xf32>
    %84 = arith.truncf %83 : vector<4x8x128xf32> to vector<4x8x128xbf16>
    %c0_86 = arith.constant 0 : index
    %c0_87 = arith.constant 0 : index
    %c0_88 = arith.constant 0 : index
    %85 = vector.load %arg8[%c0_86, %c0_87, %c0_88] : memref<4x8x128xbf16, #tpu.memory_space<vmem>>, vector<4x8x128xbf16>
    tpu.vector_store %arg8[%c0_86, %c0_87, %c0_88], %84 {strides = array<i32>} : memref<4x8x128xbf16, #tpu.memory_space<vmem>>, vector<4x8x128xbf16>,
    return
  }
  func.func @transform_0(%arg0: i32) -> (i32, i32, i32, i32) {
    %c0_i32 = arith.constant 0 : i32
    %c0_i32_0 = arith.constant 0 : i32
    %c0_i32_1 = arith.constant 0 : i32
    %c0_i32_2 = arith.constant 0 : i32
    return %c0_i32, %arg0, %c0_i32_0, %c0_i32_1 : i32, i32, i32, i32
  }
  func.func @transform_1(%arg0: i32) -> (i32, i32, i32) {
    %c0_i32 = arith.constant 0 : i32
    %c0_i32_0 = arith.constant 0 : i32
    %c0_i32_1 = arith.constant 0 : i32
    %c0_i32_2 = arith.constant 0 : i32
    return %c0_i32, %c0_i32_0, %c0_i32_1 : i32, i32, i32
  }
  func.func @transform_2(%arg0: i32) -> (i32, i32) {
    %c0_i32 = arith.constant 0 : i32
    %c0_i32_0 = arith.constant 0 : i32
    %c0_i32_1 = arith.constant 0 : i32
    return %c0_i32, %c0_i32_0 : i32, i32
  }
  func.func @transform_3(%arg0: i32) -> (i32, i32, i32) {
    %c0_i32 = arith.constant 0 : i32
    %c0_i32_0 = arith.constant 0 : i32
    %c0_i32_1 = arith.constant 0 : i32
    %c0_i32_2 = arith.constant 0 : i32
    return %c0_i32, %c0_i32_0, %c0_i32_1 : i32, i32, i32
  }
  func.func @transform_4(%arg0: i32) -> (i32, i32) {
    %c0_i32 = arith.constant 0 : i32
    %c0_i32_0 = arith.constant 0 : i32
    %c0_i32_1 = arith.constant 0 : i32
    return %c0_i32, %c0_i32_0 : i32, i32
  }
  func.func @transform_5(%arg0: i32) -> (i32, i32, i32) {
    %c0_i32 = arith.constant 0 : i32
    %c0_i32_0 = arith.constant 0 : i32
    %c0_i32_1 = arith.constant 0 : i32
    %c0_i32_2 = arith.constant 0 : i32
    return %c0_i32, %c0_i32_0, %c0_i32_1 : i32, i32, i32
  }
  func.func @transform_6(%arg0: i32) -> (i32, i32) {
    %c0_i32 = arith.constant 0 : i32
    %c0_i32_0 = arith.constant 0 : i32
    %c0_i32_1 = arith.constant 0 : i32
    return %c0_i32, %c0_i32_0 : i32, i32
  }
  func.func @transform_7(%arg0: i32) -> (i32, i32, i32) {
    %c0_i32 = arith.constant 0 : i32
    %c0_i32_0 = arith.constant 0 : i32
    %c0_i32_1 = arith.constant 0 : i32
    return %arg0, %c0_i32, %c0_i32_0 : i32, i32, i32
  }
}

</mosaic_0001>

<bundles_post_ra>
// kernel: tpu_custom_call.1
= control target key start
LH: loop header
LB: loop body
LE: loop exit
PB: predicated region body
PF: predicated region fallthrough
CT: control target
= control target key end

     0   :  { %12 = vsyncpa [#allocation6], 0  ;;  %s3332_s0 = inlined_call_operand.vmem [shape: bf16[2,8,9,144], index: 0, kind: input, shape index: {}]   ;;  %s3333_s1 = inlined_call_operand.vmem [shape: bf16[3,144,128], index: 1, kind: input, shape index: {}]   ;;  %s3334_s2 = inlined_call_operand.vmem [shape: f32[1,128], index: 2, kind: input, shape index: {}]   ;;  %s3335_s3 = inlined_call_operand.hbm [shape: bf16[3,128,128], index: 3, kind: input, shape index: {}]   ;;  %s3336_s4 = inlined_call_operand.vmem [shape: f32[1,128], index: 4, kind: input, shape index: {}]   ;;  %s3337_s5 = inlined_call_operand.vmem [shape: bf16[3,128,128], index: 5, kind: input, shape index: {}]   ;;  %s3338_s6 = inlined_call_operand.vmem [shape: f32[1,128], index: 6, kind: input, shape index: {}]   ;;  %s3339_s7 = inlined_call_operand.hbm [shape: bf16[8,8,128], index: 7, kind: output, shape index: {}]  }
   0x1   :  { %13 = vsyncpa [#allocation7], 0 }
   0x2   :  { %15 = vsyncpa [#allocation7 + $0x1], 0  ;;  %s2794_s24 = smov 0   ;;  %s2796_s25 = smov 0  }
   0x3   :  { %s2798_s26 = smov 0   ;;  %s2800_s27 = smov 0  }
   0x4 LB: > { %s2815_s28 = sadd.s32 4294967295, %s2745_s27   ;;  %s2080_s29 = sadd.s32 4294967294, %s2745_s27   ;;  %s2745_s27 = sphi %s2800_s27, %s3367_s27   ;;  %s2741_s26 = sphi %s2798_s26, %s3366_s26   ;;  %s2737_s25 = sphi %s2796_s25, %s3365_s25   ;;  %s2733_s24 = sphi %s2794_s24, %s3364_s24  }
   0x5   : > { %s2819_s30 = sadd.s32 1, %s2745_s27   ;;  %s28_s8 = sadd.s32 1, %s2741_s26 }
   0x6   : > { %s25_s9 = ssub.s32 %s2745_s27, %s2819_s30  ;;  %p35_p0 = scmp.ne.s32.totalorder %s2741_s26, %s2737_s25 }
   0x7   : > { %p26_p1 = scmp.eq.s32.totalorder %s25_s9, 0  ;;  %p36_p2 = scmp.eq.s32.totalorder %s2745_s27, 0 }
   0x8   : > { %p191_p3 = scmp.eq.s32.totalorder %s2815_s28, 1  ;;  %p196_p4 = scmp.ne.s32.totalorder %s2737_s25, %s2733_s24 }
   0x9   : > { %s2831_s10 = scalar_select %p26_p1, %s2741_s26, %s28_s8  }
   0xa   : > { %p2833_p5 = por %p36_p2, %p35_p0  ;;  %p2837_p6 = por %p191_p3, %p35_p0 }
   0xb   : > { %p197_p7 = scmp.eq.s32.totalorder %s2080_s29, 1  ;;  %p2081_p8 = scmp.ge.s32.totalorder %s2745_s27, 1 }
   0xc   : > { %s3343_s11 = scalar_select %p2833_p5, 1, 0 }
   0xd   : > { %s3344_s12 = scalar_select %p2837_p6, 1, 0 }
   0xe   : > { %p204_p9 = scmp.lt.s32.totalorder %s2745_s27, 3  ;;  %p2843_p10 = por %p197_p7, %p196_p4 }
   0xf   : > { %p3340_p11 = scmp.eq.s32.totalorder %s2815_s28, 0  ;;  %s2747_s15 = smov [#allocation5]  }
  0x10   : > { %s3345_s13 = scalar_select %p2843_p10, 1, 0 }
  0x11   : > { %p2848_p12 = pnand %p2081_p8, %p204_p9  ;;  %s222_s16 = sshll.u32 %s2747_s15, 4  ;;  %s223_s16 = int_to_ptr.vmem [resolvable:$true] %s222_s16 }
  0x12   : > { %s2651_s20 = scalar_lea.hbm %s3335_s3, 3072 }
  0x13   : > { %s3346_s14 = scalar_select %p2848_p12, 1, 0 }
  0x14   : > { %p2513_p13 = pneg %p2848_p12  ;;  %p2652_p1 = scmp.ne.s32.totalorder %s3335_s3, %s2651_s20 }
  0x15   : > { %p2658_p7 = scmp.lt.u32.totalorder %s2651_s20, %s3335_s3 }
  0x16   : > { %p2856_p0 = pnand %p3340_p11, %p2513_p13 }
  0x18   : > { %p2653_p2 = pneg %p2856_p0 }
  0x1a   : > { %p2654_p3 = pnand %p2653_p2, %p2652_p1 }
  0x1c   : > { %p2655_p4 = pneg %p2654_p3 }
  0x1e   : > { %p2660_p8 = pnand %p2658_p7, %p2655_p4 }
  0x20   : > { %2663 = shalt.err (!%p2660_p8)
}
  0x21   : > { %s2664_s8 = scalar_lea.vmem %s223_s16, 3072  ;;  %p2672_p10 = scmp.lt.s32.totalorder %s223_s16, %s223_s16 }
  0x22   : > { %p2665_p9 = scmp.ne.s32.totalorder %s223_s16, %s2664_s8  ;;  %p2673_p6 = scmp.lt.s32.totalorder %s2664_s8, %s2664_s8 }
  0x24   : > { %p2667_p13 = pnand %p2665_p9, %p2653_p2  ;;  %p2674_p12 = por %p2673_p6, %p2672_p10 }
  0x26   : > { %p2668_p11 = pneg %p2667_p13 }
  0x28   : > { %p2675_p5 = pnand %p2674_p12, %p2668_p11 }
  0x2a   : > { %2678 = shalt.err (!%p2675_p5)
}
  0x2b   : > { %s2748_s9 = smov 64   ;;  %s2749_s15 = smov 4  }
  0x2c   : > { %2516 = dma.hbm_to_vmem [thread:$0]  (!%p2856_p0), %s3335_s3, 3072, %s223_s16, [#allocation6], %s2748_s9, %s2748_s9, %s2749_s15  }
  0x2d   : > { %p2083_p1 = scmp.ge.s32.totalorder %s2745_s27, 2 }
  0x2e   : > { %p3348_p2 = scmp.ne.s32.totalorder (!%p2083_p1), %s3343_s11, 0 }
  0x2f   : > { %241 = sbr.rel (%p2083_p1) target bundleno = 66 (0x42), region = 40 }
  0x36   : > { %244 = sbr.rel (!%p3348_p2) target bundleno = 66 (0x42), region = 44  ;;  %s246_s20 = sand.u32 (%p3348_p2), 1, %s2741_s26  }
  0x37   : > { %s2290_s21 = sshll.u32 (%p3348_p2), %s2745_s27, 6  ;;  %s2084_s22 = sshll.u32 (%p3348_p2), %s246_s20, 7 }
  0x38   : > { %s2886_s17 = scalar_lea.vmem (%p3348_p2), %s3332_s0, %s2290_s21  ;;  %s248_s11 = scalar_lea.vmem (%p3348_p2), [#allocation4], %s2084_s22 }
  0x39   : > { %v310_v0 = vld [vmem:[%s2886_s17] sm:$0xff] (%p3348_p2)  ;;  %v312_v1 = vld [vmem:[%s2886_s17 + $0x8] sm:$0xff] (%p3348_p2)  ;;  %v314_v2 = vld [vmem:[%s2886_s17 + $0x10] sm:$0xff] (%p3348_p2) }
  0x3a   : > { %311 = vst [vmem:[%s248_s11] sm:$0xff] (%p3348_p2), %v310_v0  ;;  %313 = vst [vmem:[%s248_s11 + $0x8] sm:$0xff] (%p3348_p2), %v312_v1  ;;  %v316_v3 = vld [vmem:[%s2886_s17 + $0x18] sm:$0xff] (%p3348_p2)  ;;  %v318_v4 = vld [vmem:[%s2886_s17 + $0x20] sm:$0xff] (%p3348_p2) }
  0x3b   : > { %315 = vst [vmem:[%s248_s11 + $0x10] sm:$0xff] (%p3348_p2), %v314_v2  ;;  %v320_v5 = vld [vmem:[%s2886_s17 + $0x28] sm:$0xff] (%p3348_p2)  ;;  %317 = vst [vmem:[%s248_s11 + $0x18] sm:$0xff] (%p3348_p2), %v316_v3  ;;  %v322_v6 = vld [vmem:[%s2886_s17 + $0x30] sm:$0xff] (%p3348_p2) }
  0x3c   : > { %319 = vst [vmem:[%s248_s11 + $0x20] sm:$0xff] (%p3348_p2), %v318_v4  ;;  %321 = vst [vmem:[%s248_s11 + $0x28] sm:$0xff] (%p3348_p2), %v320_v5  ;;  %v324_v7 = vld [vmem:[%s2886_s17 + $0x38] sm:$0xff] (%p3348_p2)  ;;  %v326_v8 = vld [vmem:[%s2886_s17 + $0x80] sm:$0xff] (%p3348_p2) }
  0x3d   : > { %323 = vst [vmem:[%s248_s11 + $0x30] sm:$0xff] %v322_v6  ;;  %325 = vst [vmem:[%s248_s11 + $0x38] sm:$0xff] %v324_v7  ;;  %v328_v9 = vld [vmem:[%s2886_s17 + $0x88] sm:$0xff]  ;;  %v330_v10 = vld [vmem:[%s2886_s17 + $0x90] sm:$0xff] }
  0x3e   : > { %327 = vst [vmem:[%s248_s11 + $0x40] sm:$0xff] %v326_v8  ;;  %v332_v11 = vld [vmem:[%s2886_s17 + $0x98] sm:$0xff]  ;;  %329 = vst [vmem:[%s248_s11 + $0x48] sm:$0xff] %v328_v9  ;;  %v334_v12 = vld [vmem:[%s2886_s17 + $0xa0] sm:$0xff] }
  0x3f   : > { %331 = vst [vmem:[%s248_s11 + $0x50] sm:$0xff] %v330_v10  ;;  %333 = vst [vmem:[%s248_s11 + $0x58] sm:$0xff] %v332_v11  ;;  %v336_v13 = vld [vmem:[%s2886_s17 + $0xa8] sm:$0xff]  ;;  %v338_v14 = vld [vmem:[%s2886_s17 + $0xb0] sm:$0xff] }
  0x40   : > { %335 = vst [vmem:[%s248_s11 + $0x60] sm:$0xff] %v334_v12  ;;  %337 = vst [vmem:[%s248_s11 + $0x68] sm:$0xff] %v336_v13  ;;  %v340_v15 = vld [vmem:[%s2886_s17 + $0xb8] sm:$0xff] }
  0x41   : > { %339 = vst [vmem:[%s248_s11 + $0x70] sm:$0xff] %v338_v14  ;;  %341 = vst [vmem:[%s248_s11 + $0x78] sm:$0xff] %v340_v15 }
  0x42 PF: > { %p3349_p5 = scmp.ne.s32.totalorder %s3346_s14, 0 }
  0x43   : > { %s2907_s16 = sand.u32 (!%p3349_p5), 1, %s2737_s25   ;;  %p3350_p6 = scmp.eq.s32.totalorder (!%p3349_p5), %s2815_s28, 0 }
  0x44   : > { %350 = sbr.rel (%p3349_p5) target bundleno = 955 (0x3bb), region = 82  ;;  %s2089_s8 = sshll.u32 (!%p3349_p5), %s2907_s16, 7 }
  0x45   : > { %s2910_s9 = scalar_lea.vmem (!%p3349_p5), [#allocation4], %s2089_s8 }
  0x4b   : > { %2724 = dma.done.wait (%p3350_p6), [#allocation6], 3072   ;;  %p3351_p10 = pmov %p3350_p6 }
  0x4c   : > { %v2750_v16 = vmov 0   ;;  %v2562_v17 = vld [vmem:[%s3333_s1 + $0x48] sm:$0xff]   ;;  %v2563_v18 = vld [vmem:[%s3333_s1] sm:$0xff]   ;;  %v2564_v19 = vld [vmem:[%s3333_s1 + $0x50] sm:$0xff]   ;;  %vm562_vm0 = vcmask 130048   ;;  %vm391_vm4 = vcmask 1040384  }
  0x4d   : > { %2726 = vsyncadd (%p3351_p10), [#allocation6], 4294964224  ;;  %569 = vmatprep.subr.bf16.mxu0 %v2750_v16  ;;  %696 = vmatprep.subr.bf16.mxu1 %v2750_v16  ;;  %v2565_v20 = vld [vmem:[%s3333_s1 + $0x8] sm:$0xff]   ;;  %v2566_v21 = vld [vmem:[%s3333_s1 + $0x58] sm:$0xff]   ;;  %vm753_vm1 = vsmask.f32 3328 }
  0x4e   : > { %570 = vmatpush1.bf16.msra.mxu0 %v2562_v17  ;;  %697 = vmatpush1.bf16.msra.mxu1 %v2563_v18  ;;  %v2567_v22 = vld [vmem:[%s3333_s1 + $0x10] sm:$0xff]   ;;  %v2568_v23 = vld [vmem:[%s3333_s1 + $0x60] sm:$0xff]   ;;  %v2569_v24 = vld [vmem:[%s3333_s1 + $0x18] sm:$0xff]   ;;  %vm754_vm2 = vsmask.f32 7440  ;;  %vm1025_vm9 = vcmask 1043456  }
  0x4f   : > { %571 = vmatprep.subr.bf16.mxu0 %v2750_v16  ;;  %698 = vmatprep.subr.bf16.mxu1 %v2750_v16  ;;  %v2570_v25 = vld [vmem:[%s3333_s1 + $0x68] sm:$0xff]   ;;  %v2571_v26 = vld [vmem:[%s3333_s1 + $0x20] sm:$0xff]   ;;  %v2572_v27 = vld [vmem:[%s3333_s1 + $0x70] sm:$0xff]   ;;  %vm392_vm5 = vsmask.f32 256  ;;  %vm1071_vm11 = vcmask 1042432  }
  0x50   : > { %v2573_v28 = vld [vmem:[%s3333_s1 + $0x28] sm:$0xff]   ;;  %v2965_v30 = vld [vmem:[%s2910_s9] sm:$0xff]  ;;  %v2575_v36 = vld [vmem:[%s3333_s1 + $0x30] sm:$0xff]   ;;  %vm406_vm7 = vsmask.f32 7938  ;;  %vm1072_vm12 = vcmask 1046532  }
  0x51   : > { %v2582_v29 = vld [vmem:[%s2910_s9 + $0x44] ss:$16 sps:$4 sm:$0xff]   ;;  %v757_v34 = vshrl.u32 %v2965_v30, 16  ;;  %v760_v35 = vshll.u32 %v2965_v30, 16  ;;  %v2576_v39 = vld [vmem:[%s3333_s1 + $0x80] sm:$0xff]   ;;  %v2585_v4 = vld [vmem:[%s3333_s1 + $0x90] sm:$0xff]  }
  0x52   : > { %572 = vmatpush1.bf16.msra.mxu0 %v2564_v19  ;;  %699 = vmatpush1.bf16.msra.mxu1 %v2565_v20  ;;  %v2968_v31 = vld [vmem:[%s2910_s9 + $0x10] sm:$0xff]  ;;  %v2574_v33 = vld [vmem:[%s3333_s1 + $0x78] sm:$0xff]   ;;  %v2579_v49 = vld [vmem:[%s3333_s1 + $0x40] sm:$0xff]   ;;  %s2091_s22 = sshll.u32 %s2907_s16, 4  ;;  %s2299_s23 = sshll.u32 %s2815_s28, 8 }
  0x53   : > { %573 = vmatprep.subr.bf16.mxu0 %v2750_v16  ;;  %700 = vmatprep.subr.bf16.mxu1 %v2750_v16  ;;  %v2130_v32 = vcombine.high %v2965_v30, %v2968_v31  ;;  %v771_v37 = vshrl.u32 %v2968_v31, 16  ;;  %v774_v38 = vshll.u32 %v2968_v31, 16  ;;  %v759_v40 = vrot.slane %v757_v34, 4  ;;  %v2577_v43 = vld [vmem:[%s3333_s1 + $0x38] sm:$0xff]   ;;  %v2578_v47 = vld [vmem:[%s3333_s1 + $0x88] sm:$0xff]   ;;  %vm3027_vm3 = vmor %vm753_vm1, %vm754_vm2  ;;  %s387_s29 = scalar_lea.vmem [#allocation8], %s2091_s22  ;;  %s3286_s14 = scalar_lea.hbm %s3339_s7, %s2299_s23 }
  0x54   : > { %2127 = vmatprep.mubr.msk.bf16.mxu0 %vm562_vm0, %v2582_v29  ;;  %v762_v41 = vrot.slane %v760_v35, 5  ;;  %v2995_v44 = vld [vmem:[%s2910_s9 + $0x20] sm:$0xff]  ;;  %v447_v54 = vld [vmem:[%s2910_s9 + $0x30] sm:$0xff]  ;;  %v746_v55 = vld [vmem:[%s2910_s9 + $0x8] sm:$0x11]  ;;  %v2129_v3 = vcombine.low %v2965_v30, %v2968_v31  ;;  %s2000_s17 = sshll.u32 %s387_s29, 4  ;;  %s3288_s17 = int_to_ptr.vmem [resolvable:$true] %s2000_s17 }
  0x55   : > { %2142 = vmatprep.mubr.msk.bf16.mxu1 %vm562_vm0, %v2130_v32  ;;  %v773_v42 = vrot.slane %v771_v37, 4  ;;  %v776_v45 = vrot.slane %v774_v38, 5  ;;  %v785_v46 = vshrl.u32 %v2995_v44, 16  ;;  %v788_v48 = vshll.u32 %v2995_v44, 16  ;;  %v2580_v53 = vld [vmem:[%s2910_s9 + $0x40] ss:$16 sps:$4 sm:$0xff]   ;;  %vm3074_vm6 = vmand %vm391_vm4, %vm392_vm5 }
  0x56   : > { %574 = vmatpush1.bf16.msra.mxu0 %v2566_v21  ;;  %701 = vmatpush1.bf16.msra.mxu1 %v2567_v22  ;;  %v763_v50 = vor.u32 %v762_v41, %v759_v40  ;;  %v748_v56 = vld [vmem:[%s2910_s9 + $0x18] sm:$0x11]  ;;  %v766_v58 = vshll.u32 %v746_v55, 16  ;;  %v750_v60 = vld [vmem:[%s2910_s9 + $0x28] sm:$0x11]  ;;  %v799_v1 = vshrl.u32 %v447_v54, 16  ;;  %v2132_v13 = vcombine.high %v2995_v44, %v447_v54  ;;  %vm3081_vm8 = vmand %vm391_vm4, %vm406_vm7 }
  0x57   : > { %575 = vmatprep.subr.bf16.mxu0 %v2750_v16  ;;  %702 = vmatprep.subr.bf16.mxu1 %v2750_v16  ;;  %v777_v51 = vor.u32 %v776_v45, %v773_v42  ;;  %v787_v52 = vrot.slane %v785_v46, 4  ;;  %v790_v57 = vrot.slane %v788_v48, 5  ;;  %v780_v59 = vshll.u32 %v748_v56, 16  ;;  %v752_v61 = vld [vmem:[%s2910_s9 + $0x38] sm:$0x11]  ;;  %v2586_v12 = vld [vmem:[%s3333_s1 + $0x98] sm:$0xff]   ;;  %vm3115_vm10 = vmand %vm1025_vm9, %vm406_vm7 }
  0x58   : > { %v2591_v62 = vld [vmem:[%s2910_s9 + $0x64] ss:$16 sps:$4 sm:$0xff]   ;;  %v794_v0 = vshll.u32 %v750_v60, 16  ;;  %v802_v2 = vshll.u32 %v447_v54, 16  ;;  %v764_v5 = vrot.slane %v763_v50, 4  ;;  %v768_v6 = vrot.slane %v766_v58, 5  ;;  %vm3140_vm13 = vmor %vm1071_vm11, %vm1072_vm12 }
  0x59   : > { %v791_v63 = vor.u32 %v790_v57, %v787_v52  ;;  %v778_v7 = vrot.slane %v777_v51, 4  ;;  %v782_v8 = vrot.slane %v780_v59, 5  ;;  %v801_v9 = vrot.slane %v799_v1, 4  ;;  %v2593_v19 = vld [vmem:[%s2910_s9 + $0x60] ss:$16 sps:$4 sm:$0xff]   ;;  %v2587_v22 = vld [vmem:[%s3333_s1 + $0xa0] sm:$0xff]  }
  0x5a   : > { %576 = vmatpush1.bf16.msra.mxu0 %v2568_v23  ;;  %703 = vmatpush1.bf16.msra.mxu1 %v2569_v24  ;;  %v804_v10 = vrot.slane %v802_v2, 5  ;;  %v808_v11 = vshll.u32 %v752_v61, 16  ;;  %v796_v17 = vrot.slane %v794_v0, 5  ;;  %v769_v23 = vsel %vm3027_vm3, %v764_v5, %v768_v6  ;;  %v2590_v29 = vld [vmem:[%s3333_s1 + $0xb8] sm:$0xff]   ;;  %v2595_v30 = vld [vmem:[%s3333_s1 + $0xc0] sm:$0xff]   ;;  %v2597_v31 = vld [vmem:[%s3333_s1 + $0xc8] sm:$0xff]  }
  0x5b   : > { %577 = vmatprep.subr.bf16.mxu0 %v2750_v16  ;;  %704 = vmatprep.subr.bf16.mxu1 %v2750_v16  ;;  %v792_v15 = vrot.slane %v791_v63, 4  ;;  %v783_v24 = vsel %vm3027_vm3, %v778_v7, %v782_v8  ;;  %v2598_v32 = vld [vmem:[%s3333_s1 + $0xd0] sm:$0xff]   ;;  %v2599_v38 = vld [vmem:[#allocation5 + $0x40] sm:$0xff]   ;;  %v2604_v48 = vld [vmem:[#allocation5 + $0x68] sm:$0xff]   ;;  %s1987_s28 = scalar_lea.sflag [#allocation7], %s2907_s16  ;;  %s2679_s15 = scalar_lea.vmem %s3288_s17, 256 }
  0x5c   : > { %v805_v18 = vor.u32 %v804_v10, %v801_v9  ;;  %v810_v21 = vrot.slane %v808_v11, 5  ;;  %v2162_v35 = vcombine.low %v769_v23, %v783_v24  ;;  %v394_v41 = vld [vmem:[#allocation2] sm:$0x1]  ;;  %v408_v42 = vld [vmem:[#allocation2 + $0x4] sm:$0x1]  ;;  %v2630_v10 = vld [vmem:[%s3337_s5] sm:$0xff]   ;;  %p2680_p11 = scmp.ne.s32.totalorder %s3288_s17, %s2679_s15 }
  0x5d   : > { %v409_v46 = vsel %vm3081_vm8, 0, %v408_v42  ;;  %v411_v50 = vld [vmem:[#allocation2 + $0xc] sm:$0x1]  ;;  %v400_v55 = vld [vmem:[#allocation2 + $0x10] sm:$0x1]  ;;  %v3099_v63 = vld [vmem:[#allocation5] sm:$0xff]  }
  0x5e   : > { %578 = vmatpush1.bf16.msra.mxu0 %v2570_v25  ;;  %705 = vmatpush1.bf16.msra.mxu1 %v2571_v26  ;;  %v806_v20 = vrot.slane %v805_v18, 4  ;;  %v2131_v25 = vcombine.low %v2995_v44, %v447_v54  ;;  %v2163_v26 = vcombine.high %v769_v23, %v783_v24  ;;  %v395_v44 = vsel %vm3074_vm6, 0, %v394_v41  ;;  %410 = vst [vmem:[#allocation2 + $0x4] sm:$0x1] %v409_v46  ;;  %v2606_v54 = vld [vmem:[#allocation5 + $0x78] sm:$0xff]   ;;  %v2638_v45 = vld [vmem:[%s3337_s5 + $0x28] sm:$0xff]  }
  0x5f   : > { %579 = vmatprep.subr.bf16.mxu0 %v2750_v16  ;;  %706 = vmatprep.subr.bf16.mxu1 %v2750_v16  ;;  %396 = vst [vmem:[#allocation2] sm:$0x1] %v395_v44  ;;  %v412_v52 = vsel %vm3081_vm8, 0, %v411_v50  ;;  %v414_v56 = vld [vmem:[#allocation2 + $0x14] sm:$0x1]  ;;  %v401_v57 = vsel %vm3074_vm6, 0, %v400_v55 }
  0x60   : > { %v811_v34 = vsel %vm3027_vm3, %v806_v20, %v810_v21  ;;  %413 = vst [vmem:[#allocation2 + $0xc] sm:$0x1] %v412_v52  ;;  %v415_v58 = vsel %vm3081_vm8, 0, %v414_v56  ;;  %402 = vst [vmem:[#allocation2 + $0x10] sm:$0x1] %v401_v57  ;;  %p3362_p12 = scmp.ne.s32.totalorder %s3344_s12, 0 }
  0x61   : > { %416 = vst [vmem:[#allocation2 + $0x14] sm:$0x1] %v415_v58  ;;  %v403_v59 = vld [vmem:[#allocation2 + $0x18] sm:$0x1]  ;;  %v417_v60 = vld [vmem:[#allocation2 + $0x1c] sm:$0x1] }
  0x62   : > { %580 = vmatpush1.bf16.msra.mxu0 %v2572_v27  ;;  %707 = vmatpush1.bf16.msra.mxu1 %v2573_v28  ;;  %v2588_v27 = vld [vmem:[%s3333_s1 + $0xa8] sm:$0xff]   ;;  %v2589_v28 = vld [vmem:[%s3333_s1 + $0xb0] sm:$0xff]   ;;  %v404_v61 = vsel %vm3074_vm6, 0, %v403_v59  ;;  %p2681_p0 = pnand %p2680_p11, %p3362_p12  ;;  %s2751_s18 = smov [#allocation8]  }
  0x63   : > { %581 = vmatprep.subr.bf16.mxu0 %v2750_v16  ;;  %708 = vmatprep.subr.bf16.mxu1 %v2750_v16  ;;  %405 = vst [vmem:[#allocation2 + $0x18] sm:$0x1] %v404_v61  ;;  %v426_v14 = vld [vmem:[#allocation3 + $0x10] sm:$0x1]  ;;  %s2683_s19 = sshll.u32 %s2751_s18, 4  ;;  %s2684_s19 = int_to_ptr.vmem [resolvable:$false] %s2683_s19 }
  0x64   : > { %v427_v20 = vsel %vm3074_vm6, 0, %v426_v14  ;;  %p2682_p3 = pneg %p2681_p0  ;;  %s2685_s20 = scalar_lea.vmem %s2684_s19, 512 }
  0x65   : > { %428 = vst [vmem:[#allocation3 + $0x10] sm:$0x1] %v427_v20  ;;  %p2686_p4 = scmp.lt.s32.totalorder %s3288_s17, %s2684_s19  ;;  %p2687_p7 = scmp.lt.s32.totalorder %s2685_s20, %s2679_s15 }
  0x66   : > { %582 = vmatpush1.bf16.msra.mxu0 %v2574_v33  ;;  %709 = vmatpush1.bf16.msra.mxu1 %v2575_v36  ;;  %v797_v33 = vsel %vm3027_vm3, %v792_v15, %v796_v17  ;;  %v438_v15 = vld [vmem:[#allocation3 + $0x14] sm:$0x1]  ;;  %v1027_v52 = vld [vmem:[#allocation2] sm:$0xf] }
  0x67   : > { %583 = vmatprep.subr.bf16.mxu0 %v2750_v16  ;;  %710 = vmatprep.subr.bf16.mxu1 %v2750_v16  ;;  %v2165_v36 = vcombine.high %v797_v33, %v811_v34  ;;  %v2164_v37 = vcombine.low %v797_v33, %v811_v34  ;;  %v439_v21 = vsel %vm3081_vm8, 0, %v438_v15  ;;  %v1036_v61 = vld [vmem:[#allocation2 + $0xc] sm:$0x1]  ;;  %v1039_v15 = vld [vmem:[#allocation2 + $0x10] sm:$0xf]  ;;  %p2688_p8 = por %p2687_p7, %p2686_p4 }
  0x68   : > { %440 = vst [vmem:[#allocation3 + $0x14] sm:$0x1] %v439_v21 }
  0x69   : > { %p2689_p9 = pnand %p2688_p8, %p2682_p3 }
  0x6a   : > { %584 = vmatpush1.bf16.msra.mxu0 %v2576_v39  ;;  %711 = vmatpush1.bf16.msra.mxu1 %v2577_v43  ;;  %v2600_v39 = vld [vmem:[#allocation5 + $0x48] sm:$0xff]   ;;  %v2602_v43 = vld [vmem:[#allocation5 + $0x58] sm:$0xff]  }
  0x6b   : > { %585 = vmatprep.subr.bf16.mxu0 %v2750_v16  ;;  %712 = vmatprep.subr.bf16.mxu1 %v2750_v16 }
  0x6e   : > { %586 = vmatpush1.bf16.msra.mxu0 %v2578_v47  ;;  %713 = vmatpush1.bf16.msra.mxu1 %v2579_v49  ;;  %v2603_v47 = vld [vmem:[#allocation5 + $0x60] sm:$0xff]   ;;  %v397_v49 = vld [vmem:[#allocation2 + $0x8] sm:$0x1] }
  0x6f   : > { %905 = vmatprep.subr.bf16.mxu0 %v2750_v16  ;;  %2371 = vmatprep.subr.bf16.mxu1 %v2599_v38  ;;  %v398_v51 = vsel %vm3074_vm6, 0, %v397_v49 }
  0x70   : > { %399 = vst [vmem:[#allocation2 + $0x8] sm:$0x1] %v398_v51 }
  0x71   : > { %602 = vmatmul.mubr.bf16.vlgmr.msra.gmra.mrb[0].mxu0 %v2580_v53  ;;  %729 = vmatmul.mubr.bf16.vlgmr.msra.gmra.mrb[0].mxu1 %v2129_v3  ;;  %v2605_v53 = vld [vmem:[#allocation5 + $0x70] sm:$0xff]  }
  0x72   : > { %906 = vmatpush1.bf16.msra.mxu0 %v2585_v4  ;;  %2128 = vmatprep.mubr.msk.bf16.mxu0 %vm562_vm0, %v2591_v62  ;;  %v418_v62 = vsel %vm3081_vm8, 0, %v417_v60 }
  0x73   : > { %907 = vmatprep.subr.bf16.mxu0 %v2750_v16  ;;  %2143 = vmatprep.mubr.msk.bf16.mxu1 %vm562_vm0, %v2132_v13  ;;  %419 = vst [vmem:[#allocation2 + $0x1c] sm:$0x1] %v418_v62 }
  0x74   : > { %2372 = vmatpush3.bf16.msra.mxu1 %v2599_v38 }
  0x75   : > { %2373 = vmatprep.subr.bf16.mxu1 %v2600_v39 }
  0x76   : > { %908 = vmatpush1.bf16.msra.mxu0 %v2586_v12 }
  0x77   : > { %909 = vmatprep.subr.bf16.mxu0 %v2750_v16  ;;  %v1033_v60 = vld [vmem:[#allocation2 + $0x8] sm:$0xf] }
  0x78   : > { %2374 = vmatpush3.bf16.msra.mxu1 %v2600_v39 }
  0x79   : > { %610 = vmatmul.mubr.bf16.gmra.mrb[4].mxu0 %v2593_v19  ;;  %737 = vmatmul.mubr.bf16.gmra.mrb[4].mxu1 %v2131_v25 }
  0x7a   : > { %910 = vmatpush1.bf16.msra.mxu0 %v2587_v22  ;;  %2175 = vmatprep.mubr.msk.bf16.mxu0 %vm562_vm0, %v2163_v26 }
  0x7b   : > { %911 = vmatprep.subr.bf16.mxu0 %v2750_v16 }
  0x7e   : > { %912 = vmatpush1.bf16.msra.mxu0 %v2588_v27  ;;  %v2177_v27 = vld [vmem:[%s3334_s2] ss:$0 sm:$0xff] }
  0x7f   : > { %913 = vmatprep.subr.bf16.mxu0 %v2750_v16 }
  0x82   : > { %914 = vmatpush1.bf16.msra.mxu0 %v2589_v28 }
  0x83   : > { %915 = vmatprep.subr.bf16.mxu0 %v2750_v16 }
  0x86   : > { %916 = vmatpush1.bf16.msra.mxu0 %v2590_v29 }
  0x87   : > { %917 = vmatprep.subr.bf16.mxu0 %v2750_v16 }
  0x8a   : > { %918 = vmatpush1.bf16.msra.mxu0 %v2595_v30 }
  0x8b   : > { %919 = vmatprep.subr.bf16.mxu0 %v2750_v16 }
  0x8e   : > { %920 = vmatpush1.bf16.msra.mxu0 %v2597_v31 }
  0x8f   : > { %921 = vmatprep.subr.bf16.mxu0 %v2750_v16  ;;  %v2601_v16 = vld [vmem:[#allocation5 + $0x50] sm:$0xff]  }
  0x90   : > { %2375 = vmatprep.subr.bf16.mxu1 %v2601_v16 }
  0x91   : > { %2376 = vmatpush3.bf16.msra.mxu1 %v2601_v16 }
  0x92   : > { %922 = vmatpush1.bf16.msra.mxu0 %v2598_v32  ;;  %2377 = vmatprep.subr.bf16.mxu1 %v2602_v43 }
  0x93   : > { %2451 = vmatprep.subr.bf16.mxu0 %v2630_v10 }
  0x95   : > { %938 = vmatmul.mubr.bf16.vlgmr.msra.gmra.mrb[8].mxu0 %v2162_v35  ;;  %2378 = vmatpush3.bf16.msra.mxu1 %v2602_v43 }
  0x96   : > { %2176 = vmatprep.mubr.msk.bf16.mxu0 %vm562_vm0, %v2165_v36  ;;  %2379 = vmatprep.subr.bf16.mxu1 %v2603_v47 }
  0x97   : > { %2452 = vmatpush3.bf16.msra.mxu0 %v2630_v10 }
  0x99   : > { %2380 = vmatpush3.bf16.msra.mxu1 %v2603_v47 }
  0x9a   : > { %2381 = vmatprep.subr.bf16.mxu1 %v2604_v48 }
  0x9d   : > { %946 = vmatmul.mubr.bf16.gmra.mrb[12].mxu0 %v2164_v37  ;;  %2382 = vmatpush3.bf16.msra.mxu1 %v2604_v48 }
  0x9e   : > { %2383 = vmatprep.subr.bf16.mxu1 %v2605_v53 }
  0xa1   : > { %2384 = vmatpush3.bf16.msra.mxu1 %v2605_v53  ;;  %v1030_v53 = vld [vmem:[#allocation2 + $0x4] sm:$0x1] }
  0xa2   : > { %2385 = vmatprep.subr.bf16.mxu1 %v2606_v54 }
  0xa5   : > { %2386 = vmatpush3.bf16.msra.mxu1 %v2606_v54 }
  0xa6   : > { %2391 = vmatprep.subr.bf16.mxu1 %v3099_v63 }
 0x144   : > { %v603_v0 = vpop.f32.mrb[0].mxu0  ;;  %v730_v1 = vpop.f32.mrb[0].mxu1 }
 0x145   : > { %v605_v2 = vpop.f32.mrb[1].mxu0  ;;  %v731_v3 = vadd.f32 %v730_v1, %v603_v0  ;;  %v732_v4 = vpop.f32.mrb[1].mxu1 }
 0x146   : > { %v606_v5 = vpop.f32.mrb[2].mxu0  ;;  %v733_v6 = vpop.f32.mrb[2].mxu1 }
 0x147   : > { %v608_v7 = vpop.f32.mrb[3].mxu0  ;;  %v734_v8 = vadd.f32 %v733_v6, %v606_v5  ;;  %v735_v9 = vpop.f32.mrb[3].mxu1 }
 0x14c   : > { %v611_v11 = vpop.f32.mrb[4].mxu0  ;;  %v738_v13 = vpop.f32.mrb[4].mxu1 }
 0x14d   : > { %v613_v12 = vpop.f32.mrb[5].mxu0  ;;  %v739_v17 = vadd.f32 %v738_v13, %v611_v11  ;;  %v740_v19 = vpop.f32.mrb[5].mxu1  ;;  %v2608_v11 = vld [vmem:[#allocation5 + $0x8] sm:$0xff]  }
 0x14e   : > { %v614_v18 = vpop.f32.mrb[6].mxu0  ;;  %v741_v23 = vpop.f32.mrb[6].mxu1 }
 0x14f   : > { %v616_v22 = vpop.f32.mrb[7].mxu0  ;;  %v742_v24 = vadd.f32 %v741_v23, %v614_v18  ;;  %v743_v25 = vpop.f32.mrb[7].mxu1  ;;  %v1045_v23 = vld [vmem:[#allocation2 + $0x18] sm:$0xf] }
 0x150   : > { %v2609_v22 = vld [vmem:[#allocation5 + $0x10] sm:$0xff]  }
 0x168   : > { %v939_v26 = vpop.f32.mrb[8].mxu0 }
 0x169   : > { %v954_v28 = vadd.f32 %v939_v26, %v731_v3  ;;  %v941_v29 = vpop.f32.mrb[9].mxu0 }
 0x16a   : > { %v942_v30 = vpop.f32.mrb[10].mxu0 }
 0x16b   : > { %v965_v31 = vadd.f32 %v2177_v27, %v954_v28  ;;  %v955_v32 = vadd.f32 %v942_v30, %v734_v8  ;;  %v944_v33 = vpop.f32.mrb[11].mxu0 }
 0x16c   : > { %v2613_v33 = vld [vmem:[#allocation5 + $0x28] sm:$0xff]  }
 0x16d   : > { %v969_v34 = vmax.f32 %v965_v31, 0.0  ;;  %v966_v35 = vadd.f32 %v2177_v27, %v955_v32  ;;  %v2611_v31 = vld [vmem:[#allocation5 + $0x18] sm:$0xff]   ;;  %v2612_v32 = vld [vmem:[#allocation5 + $0x20] sm:$0xff]  }
 0x16f   : > { %v2291_v36 = vpack.c.bf16 %v969_v34, %v969_v34  ;;  %v970_v37 = vmax.f32 %v966_v35, 0.0 }
 0x170   : > { %v947_v38 = vpop.f32.mrb[12].mxu0 }
 0x171   : > { %v986_v39 = vshrl.u32 %v2291_v36, 16  ;;  %v2292_v16 = vpack.c.bf16 %v970_v37, %v970_v37  ;;  %v956_v41 = vadd.f32 %v947_v38, %v739_v17  ;;  %v949_v42 = vpop.f32.mrb[13].mxu0  ;;  %v3112_v44 = vpack.c.bf16 %v970_v37, %v969_v34  ;;  %v1042_v17 = vld [vmem:[#allocation2 + $0x14] sm:$0x1]  ;;  %v2615_v37 = vld [vmem:[#allocation5 + $0x38] sm:$0xff]  }
 0x172   : > { %v950_v43 = vpop.f32.mrb[14].mxu0  ;;  %v989_v47 = vshll.u32 %v2291_v36, 16  ;;  %v2614_v34 = vld [vmem:[#allocation5 + $0x30] sm:$0xff]   ;;  %v2617_v42 = vld [vmem:[#allocation5 + $0x80] sm:$0xff]  }
 0x173   : > { %v988_v46 = vrot.slane %v986_v39, 7  ;;  %v994_v48 = vshrl.u32 %v2292_v16, 16  ;;  %v967_v49 = vadd.f32 %v2177_v27, %v956_v41  ;;  %v952_v50 = vpop.f32.mrb[15].mxu0  ;;  %v997_v54 = vshll.u32 %v2292_v16, 16  ;;  %2387 = vmatprep.mubr.bf16.mxu1 %v3112_v44 }
 0x174   : > { %v957_v55 = vadd.f32 %v950_v43, %v742_v24  ;;  %v1048_v24 = vld [vmem:[#allocation2 + $0x1c] sm:$0x1] }
 0x175   : > { %v991_v56 = vor.u32 %v989_v47, %v988_v46  ;;  %v992_v57 = vrot.slane %v988_v46, 4  ;;  %v996_v58 = vrot.slane %v994_v48, 7  ;;  %v971_v59 = vmax.f32 %v967_v49, 0.0 }
 0x176   : > { %v968_v62 = vadd.f32 %v2177_v27, %v957_v55  ;;  %v2620_v55 = vld [vmem:[#allocation5 + $0x98] sm:$0xff]  }
 0x177   : > { %v1028_v0 = vsel %vm3115_vm10, %v991_v56, %v1027_v52  ;;  %v1031_v1 = vsel %vm3074_vm6, %v992_v57, %v1030_v53  ;;  %v999_v2 = vor.u32 %v997_v54, %v996_v58  ;;  %v1000_v3 = vrot.slane %v996_v58, 4  ;;  %v2618_v52 = vld [vmem:[#allocation5 + $0x88] sm:$0xff]   ;;  %v2619_v54 = vld [vmem:[#allocation5 + $0x90] sm:$0xff]   ;;  %v2621_v56 = vld [vmem:[#allocation5 + $0xa0] sm:$0xff]  }
 0x178   : > { %1029 = vst [vmem:[#allocation2] sm:$0xf] %v1028_v0  ;;  %1032 = vst [vmem:[#allocation2 + $0x4] sm:$0x1] %v1031_v1  ;;  %v2293_v4 = vpack.c.bf16 %v971_v59, %v971_v59  ;;  %v972_v5 = vmax.f32 %v968_v62, 0.0  ;;  %v2622_v57 = vld [vmem:[#allocation5 + $0xa8] sm:$0xff]  }
 0x179   : > { %v1034_v6 = vsel %vm3115_vm10, %v999_v2, %v1033_v60  ;;  %v1037_v7 = vsel %vm3074_vm6, %v1000_v3, %v1036_v61  ;;  %v2623_v58 = vld [vmem:[#allocation5 + $0xb0] sm:$0xff]   ;;  %v2624_v61 = vld [vmem:[#allocation5 + $0xb8] sm:$0xff]  }
 0x17a   : > { %1035 = vst [vmem:[#allocation2 + $0x8] sm:$0xf] %v1034_v6  ;;  %1038 = vst [vmem:[#allocation2 + $0xc] sm:$0x1] %v1037_v7  ;;  %v1002_v8 = vshrl.u32 %v2293_v4, 16  ;;  %v3128_v9 = vpack.c.bf16 %v972_v5, %v971_v59  ;;  %v2294_v10 = vpack.c.bf16 %v972_v5, %v972_v5  ;;  %v1005_v13 = vshll.u32 %v2293_v4, 16 }
 0x17b   : > { %v2625_v5 = vld [vmem:[%s3337_s5 + $0x40] sm:$0xff]  }
 0x17c   : > { %v1004_v12 = vrot.slane %v1002_v8, 7  ;;  %v1010_v14 = vshrl.u32 %v2294_v10, 16  ;;  %2388 = vmatmul.mubr.bf16.vlgmr.msra.gmra.mrb[8].mxu1 %v3128_v9  ;;  %v1013_v21 = vshll.u32 %v2294_v10, 16  ;;  %v2626_v10 = vld [vmem:[%s3337_s5 + $0x48] sm:$0xff]  }
 0x17d   : > { %2392 = vmatpush3.bf16.msra.mxu1 %v3099_v63 }
 0x17e   : > { %v1007_v18 = vor.u32 %v1005_v13, %v1004_v12  ;;  %v1008_v19 = vrot.slane %v1004_v12, 4  ;;  %v1012_v20 = vrot.slane %v1010_v14, 7  ;;  %2393 = vmatprep.subr.bf16.mxu1 %v2608_v11  ;;  %v2628_v12 = vld [vmem:[%s3337_s5 + $0x58] sm:$0xff]   ;;  %v2629_v13 = vld [vmem:[%s3337_s5 + $0x60] sm:$0xff]   ;;  %v2632_v14 = vld [vmem:[%s3337_s5 + $0x8] sm:$0xff]  }
 0x17f   : > { %v1055_v38 = vld [vmem:[#allocation2] sm:$0xe]  ;;  %v1056_v39 = vld [vmem:[#allocation2 + $0x4] sm:$0x1]  ;;  %2453 = vmatprep.subr.bf16.mxu0 %v2632_v14 }
 0x180   : > { %v1040_v25 = vsel %vm3115_vm10, %v1007_v18, %v1039_v15  ;;  %v1043_v26 = vsel %vm3074_vm6, %v1008_v19, %v1042_v17  ;;  %v1015_v27 = vor.u32 %v1013_v21, %v1012_v20  ;;  %v1016_v28 = vrot.slane %v1012_v20, 4  ;;  %v2631_v15 = vld [vmem:[%s3337_s5 + $0x68] sm:$0xff]   ;;  %2454 = vmatpush3.bf16.msra.mxu0 %v2632_v14  ;;  %v2634_v17 = vld [vmem:[%s3337_s5 + $0x10] sm:$0xff]   ;;  %v420_v19 = vld [vmem:[#allocation3] sm:$0x1] }
 0x181   : > { %1041 = vst [vmem:[#allocation2 + $0x10] sm:$0xf] %v1040_v25  ;;  %1044 = vst [vmem:[#allocation2 + $0x14] sm:$0x1] %v1043_v26  ;;  %2394 = vmatpush3.bf16.msra.mxu1 %v2608_v11  ;;  %v2610_v63 = vld [vmem:[#allocation2] ss:$8 sps:$4 sm:$0xff]   ;;  %2455 = vmatprep.subr.bf16.mxu0 %v2634_v17 }
 0x182   : > { %v1046_v29 = vsel %vm3115_vm10, %v1015_v27, %v1045_v23  ;;  %v1049_v30 = vsel %vm3074_vm6, %v1016_v28, %v1048_v24  ;;  %2395 = vmatprep.subr.bf16.mxu1 %v2609_v22  ;;  %2407 = vmatprep.mubr.bf16.mxu1 %v2610_v63  ;;  %v1057_v35 = vld [vmem:[#allocation2 + $0x8] sm:$0xe]  ;;  %v1058_v36 = vld [vmem:[#allocation2 + $0xc] sm:$0x1]  ;;  %v2182_v43 = vrot.slane %v1055_v38, 9  ;;  %v1076_v46 = vrot.slane %v1056_v39, 5 }
 0x183   : > { %1047 = vst [vmem:[#allocation2 + $0x18] sm:$0xf] %v1046_v29  ;;  %1050 = vst [vmem:[#allocation2 + $0x1c] sm:$0x1] %v1049_v30  ;;  %v2183_v16 = vrot.slane %v1057_v35, 9  ;;  %v1080_v41 = vrot.slane %v1058_v36, 5  ;;  %v1457_v36 = vunpack.c.l.bf16 %v3128_v9  ;;  %v1455_v39 = vunpack.c.l.bf16 %v3112_v44 }
 0x184   : > { %v1077_v50 = vsel %vm3140_vm13, %v2182_v43, %v1076_v46  ;;  %v2627_v11 = vld [vmem:[%s3337_s5 + $0x50] sm:$0xff]   ;;  %2456 = vmatpush3.bf16.msra.mxu0 %v2634_v17  ;;  %v432_v20 = vld [vmem:[#allocation3 + $0x4] sm:$0x1]  ;;  %v423_v28 = vld [vmem:[#allocation3 + $0x8] sm:$0x1] }
 0x185   : > { %2396 = vmatpush3.bf16.msra.mxu1 %v2609_v22  ;;  %v1081_v48 = vsel %vm3140_vm13, %v2183_v16, %v1080_v41  ;;  %v2633_v18 = vld [vmem:[%s3337_s5 + $0x70] sm:$0xff]   ;;  %v2636_v21 = vld [vmem:[%s3337_s5 + $0x18] sm:$0xff]   ;;  %v421_v22 = vsel %vm3074_vm6, 0, %v420_v19  ;;  %v433_v23 = vsel %vm3081_vm8, 0, %v432_v20  ;;  %v435_v63 = vld [vmem:[#allocation3 + $0xc] sm:$0x1] }
 0x186   : > { %2397 = vmatprep.subr.bf16.mxu1 %v2611_v31  ;;  %v2204_v53 = vcombine.low %v1077_v50, %v1081_v48  ;;  %v429_v24 = vld [vmem:[#allocation3 + $0x18] sm:$0x1]  ;;  %v441_v25 = vld [vmem:[#allocation3 + $0x1c] sm:$0x1]  ;;  %422 = vst [vmem:[#allocation3] sm:$0x1] %v421_v22  ;;  %2457 = vmatprep.subr.bf16.mxu0 %v2636_v21  ;;  %v1456_v48 = vunpack.c.h.bf16 %v3112_v44 }
 0x187   : > { %434 = vst [vmem:[#allocation3 + $0x4] sm:$0x1] %v433_v23  ;;  %v430_v26 = vsel %vm3074_vm6, 0, %v429_v24  ;;  %v442_v27 = vsel %vm3081_vm8, 0, %v441_v25  ;;  %v424_v29 = vsel %vm3074_vm6, 0, %v423_v28  ;;  %v436_v30 = vsel %vm3081_vm8, 0, %v435_v63 }
 0x188   : > { %v1059_v62 = vld [vmem:[#allocation2 + $0x10] sm:$0xe]  ;;  %v1060_v0 = vld [vmem:[#allocation2 + $0x14] sm:$0x1]  ;;  %431 = vst [vmem:[#allocation3 + $0x18] sm:$0x1] %v430_v26  ;;  %2458 = vmatpush3.bf16.msra.mxu0 %v2636_v21 }
 0x189   : > { %2398 = vmatpush3.bf16.msra.mxu1 %v2611_v31  ;;  %v2184_v3 = vrot.slane %v1059_v62, 9  ;;  %v1084_v4 = vrot.slane %v1060_v0, 5  ;;  %443 = vst [vmem:[#allocation3 + $0x1c] sm:$0x1] %v442_v27  ;;  %v2635_v31 = vld [vmem:[%s3337_s5 + $0x78] sm:$0xff]   ;;  %v3212_v35 = vld [vmem:[%s3337_s5 + $0x80] sm:$0xff]  }
 0x18a   : > { %2399 = vmatprep.subr.bf16.mxu1 %v2612_v32  ;;  %v2616_v49 = vld [vmem:[#allocation2 + $0x10] ss:$8 sps:$4 sm:$0xff]   ;;  %v1062_v60 = vld [vmem:[#allocation2 + $0x1c] sm:$0x1]  ;;  %425 = vst [vmem:[#allocation3 + $0x8] sm:$0x1] %v424_v29 }
 0x18b   : > { %v1061_v59 = vld [vmem:[#allocation2 + $0x18] sm:$0xe]  ;;  %v1088_v2 = vrot.slane %v1062_v60, 5  ;;  %v1085_v7 = vsel %vm3140_vm13, %v2184_v3, %v1084_v4  ;;  %437 = vst [vmem:[#allocation3 + $0xc] sm:$0x1] %v436_v30 }
 0x18c   : > { %v2185_v1 = vrot.slane %v1061_v59, 9  ;;  %v2214_v38 = vld [vmem:[%s3336_s4] ss:$0 sm:$0xff]  ;;  %v1545_v3 = vld [vmem:[#allocation3 + $0x14] sm:$0x1] }
 0x18d   : > { %2400 = vmatpush3.bf16.msra.mxu1 %v2612_v32  ;;  %v2637_v32 = vld [vmem:[%s3337_s5 + $0x20] sm:$0xff]  }
 0x18e   : > { %2401 = vmatprep.subr.bf16.mxu1 %v2613_v33  ;;  %v1089_v6 = vsel %vm3140_vm13, %v2185_v1, %v1088_v2  ;;  %2459 = vmatprep.subr.bf16.mxu0 %v2637_v32  ;;  %v1542_v2 = vld [vmem:[#allocation3 + $0x10] sm:$0xf] }
 0x18f   : > { %v2205_v8 = vcombine.low %v1085_v7, %v1089_v6  ;;  %2460 = vmatpush3.bf16.msra.mxu0 %v2637_v32  ;;  %v1548_v20 = vld [vmem:[#allocation3 + $0x18] sm:$0xf] }
 0x190   : > { %2461 = vmatprep.subr.bf16.mxu0 %v2638_v45  ;;  %v1551_v23 = vld [vmem:[#allocation3 + $0x1c] sm:$0x1] }
 0x191   : > { %2402 = vmatpush3.bf16.msra.mxu1 %v2613_v33  ;;  %v2639_v33 = vld [vmem:[%s3337_s5 + $0x30] sm:$0xff]   ;;  %v1536_v29 = vld [vmem:[#allocation3 + $0x8] sm:$0xf] }
 0x192   : > { %2403 = vmatprep.subr.bf16.mxu1 %v2614_v34  ;;  %v1539_v30 = vld [vmem:[#allocation3 + $0xc] sm:$0x1] }
 0x193   : > { %2462 = vmatpush3.bf16.msra.mxu0 %v2638_v45 }
 0x194   : > { %2463 = vmatprep.subr.bf16.mxu0 %v2639_v33 }
 0x195   : > { %2404 = vmatpush3.bf16.msra.mxu1 %v2614_v34  ;;  %v2640_v34 = vld [vmem:[%s3337_s5 + $0x38] sm:$0xff]  }
 0x196   : > { %2405 = vmatprep.subr.bf16.mxu1 %v2615_v37 }
 0x197   : > { %2464 = vmatpush3.bf16.msra.mxu0 %v2639_v33 }
 0x198   : > { %2465 = vmatprep.subr.bf16.mxu0 %v2640_v34 }
 0x199   : > { %2406 = vmatpush3.bf16.msra.mxu1 %v2615_v37 }
 0x19a   : > { %2411 = vmatprep.subr.bf16.mxu1 %v2617_v42 }
 0x19b   : > { %2466 = vmatpush3.bf16.msra.mxu0 %v2640_v34 }
 0x19c   : > { %2408 = vmatmul.mubr.bf16.vlgmr.msra.gmra.mrb[8].mxu1 %v2616_v49  ;;  %2471 = vmatprep.subr.bf16.mxu0 %v3212_v35 }
 0x19d   : > { %2412 = vmatpush3.bf16.msra.mxu1 %v2617_v42  ;;  %2427 = vmatprep.mubr.bf16.mxu1 %v2204_v53  ;;  %v1458_v42 = vunpack.c.h.bf16 %v3128_v9 }
 0x19e   : > { %2413 = vmatprep.subr.bf16.mxu1 %v2618_v52 }
 0x1a1   : > { %2414 = vmatpush3.bf16.msra.mxu1 %v2618_v52 }
 0x1a2   : > { %2415 = vmatprep.subr.bf16.mxu1 %v2619_v54 }
 0x1a5   : > { %2416 = vmatpush3.bf16.msra.mxu1 %v2619_v54 }
 0x1a6   : > { %2417 = vmatprep.subr.bf16.mxu1 %v2620_v55 }
 0x1a9   : > { %2418 = vmatpush3.bf16.msra.mxu1 %v2620_v55 }
 0x1aa   : > { %2419 = vmatprep.subr.bf16.mxu1 %v2621_v56 }
 0x1ad   : > { %2420 = vmatpush3.bf16.msra.mxu1 %v2621_v56 }
 0x1ae   : > { %2421 = vmatprep.subr.bf16.mxu1 %v2622_v57 }
 0x1b1   : > { %2422 = vmatpush3.bf16.msra.mxu1 %v2622_v57 }
 0x1b2   : > { %2423 = vmatprep.subr.bf16.mxu1 %v2623_v58 }
 0x1b5   : > { %2424 = vmatpush3.bf16.msra.mxu1 %v2623_v58 }
 0x1b6   : > { %2425 = vmatprep.subr.bf16.mxu1 %v2624_v61 }
 0x1b9   : > { %2426 = vmatpush3.bf16.msra.mxu1 %v2624_v61 }
 0x1ba   : > { %2431 = vmatprep.subr.bf16.mxu1 %v2625_v5 }
 0x1bc   : > { %2428 = vmatmul.mubr.bf16.vlgmr.msra.gmra.mrb[8].mxu1 %v2205_v8  ;;  %v1530_v8 = vld [vmem:[#allocation3] sm:$0xf] }
 0x1bd   : > { %2432 = vmatpush3.bf16.msra.mxu1 %v2625_v5 }
 0x1be   : > { %2433 = vmatprep.subr.bf16.mxu1 %v2626_v10 }
 0x1c1   : > { %2434 = vmatpush3.bf16.msra.mxu1 %v2626_v10 }
 0x1c2   : > { %2435 = vmatprep.subr.bf16.mxu1 %v2627_v11 }
 0x1c5   : > { %2436 = vmatpush3.bf16.msra.mxu1 %v2627_v11 }
 0x1c6   : > { %2437 = vmatprep.subr.bf16.mxu1 %v2628_v12 }
 0x1c9   : > { %2438 = vmatpush3.bf16.msra.mxu1 %v2628_v12 }
 0x1ca   : > { %2439 = vmatprep.subr.bf16.mxu1 %v2629_v13 }
 0x1cd   : > { %2440 = vmatpush3.bf16.msra.mxu1 %v2629_v13  ;;  %v1533_v13 = vld [vmem:[#allocation3 + $0x4] sm:$0x1] }
 0x1ce   : > { %2441 = vmatprep.subr.bf16.mxu1 %v2631_v15 }
 0x1d1   : > { %2442 = vmatpush3.bf16.msra.mxu1 %v2631_v15 }
 0x1d2   : > { %2443 = vmatprep.subr.bf16.mxu1 %v2633_v18 }
 0x1d5   : > { %2444 = vmatpush3.bf16.msra.mxu1 %v2633_v18 }
 0x1d6   : > { %2445 = vmatprep.subr.bf16.mxu1 %v2635_v31 }
 0x1d9   : > { %2446 = vmatpush3.bf16.msra.mxu1 %v2635_v31 }
 0x28f   : > { %v2429_v37 = vpop.f32.mrb[8].mxu1 }
 0x290   : > { %v1461_v16 = vadd.f32 %v2429_v37, %v1457_v36  ;;  %v1436_v41 = vpop.f32.mrb[9].mxu1 }
 0x291   : > { %v1459_v43 = vadd.f32 %v1455_v39, %v1436_v41  ;;  %v2430_v46 = vpop.f32.mrb[10].mxu1 }
 0x292   : > { %v1472_v49 = vadd.f32 %v2214_v38, %v1461_v16  ;;  %v1462_v50 = vadd.f32 %v2430_v46, %v1458_v42  ;;  %v1439_v52 = vpop.f32.mrb[11].mxu1 }
 0x293   : > { %v1470_v53 = vadd.f32 %v2214_v38, %v1459_v43  ;;  %v1460_v54 = vadd.f32 %v1456_v48, %v1439_v52  ;;  %v2644_v52 = vld [vmem:[%s3337_s5 + $0x88] sm:$0xff]  }
 0x294   : > { %v1476_v55 = vmax.f32 %v1472_v49, 0.0  ;;  %v1473_v56 = vadd.f32 %v2214_v38, %v1462_v50 }
 0x295   : > { %v1474_v57 = vmax.f32 %v1470_v53, 0.0  ;;  %v1471_v58 = vadd.f32 %v2214_v38, %v1460_v54 }
 0x296   : > { %v2297_v59 = vpack.c.bf16 %v1476_v55, %v1476_v55  ;;  %v1477_v60 = vmax.f32 %v1473_v56, 0.0  ;;  %v2646_v56 = vld [vmem:[%s3337_s5 + $0x98] sm:$0xff]  }
 0x297   : > { %v2295_v61 = vpack.c.bf16 %v1474_v57, %v1474_v57  ;;  %v1475_v62 = vmax.f32 %v1471_v58, 0.0  ;;  %v2649_v58 = vld [vmem:[%s3337_s5 + $0xb0] sm:$0xff]  }
 0x298   : > { %v1507_v0 = vshrl.u32 %v2297_v59, 16  ;;  %v3222_v1 = vpack.c.bf16 %v1477_v60, %v1476_v55  ;;  %v2298_v9 = vpack.c.bf16 %v1477_v60, %v1477_v60  ;;  %v1510_v7 = vshll.u32 %v2297_v59, 16  ;;  %v2645_v55 = vld [vmem:[%s3337_s5 + $0x90] sm:$0xff]  }
 0x299   : > { %v1491_v44 = vshrl.u32 %v2295_v61, 16  ;;  %v2296_v4 = vpack.c.bf16 %v1475_v62, %v1475_v62  ;;  %v3224_v5 = vpack.c.bf16 %v1475_v62, %v1474_v57  ;;  %v1494_v12 = vshll.u32 %v2295_v61, 16  ;;  %v2648_v57 = vld [vmem:[%s3337_s5 + $0xa8] sm:$0xff]   ;;  %v2650_v61 = vld [vmem:[%s3337_s5 + $0xb8] sm:$0xff]  }
 0x29a   : > { %v1509_v6 = vrot.slane %v1507_v0, 7  ;;  %v1515_v10 = vshrl.u32 %v2298_v9, 16  ;;  %v1518_v19 = vshll.u32 %v2298_v9, 16 }
 0x29b   : > { %v1493_v11 = vrot.slane %v1491_v44, 7  ;;  %v1499_v14 = vshrl.u32 %v2296_v4, 16  ;;  %2447 = vmatprep.mubr.bf16.mxu1 %v3224_v5  ;;  %v1502_v25 = vshll.u32 %v2296_v4, 16 }
 0x29c   : > { %v1512_v15 = vor.u32 %v1510_v7, %v1509_v6  ;;  %v1513_v17 = vrot.slane %v1509_v6, 4  ;;  %v1517_v18 = vrot.slane %v1515_v10, 7  ;;  %2448 = vmatmul.mubr.bf16.vlgmr.msra.gmra.mrb[12].mxu1 %v3222_v1 }
 0x29d   : > { %v1496_v21 = vor.u32 %v1494_v12, %v1493_v11  ;;  %v1497_v22 = vrot.slane %v1493_v11, 4  ;;  %v1501_v24 = vrot.slane %v1499_v14, 7 }
 0x29e   : > { %v1543_v26 = vsel %vm3115_vm10, %v1512_v15, %v1542_v2  ;;  %v1546_v27 = vsel %vm3074_vm6, %v1513_v17, %v1545_v3  ;;  %v1520_v28 = vor.u32 %v1518_v19, %v1517_v18  ;;  %v1521_v63 = vrot.slane %v1517_v18, 4  ;;  %v2283_v18 = vld [vmem:[%s3338_s6] ss:$0 sm:$0xff] }
 0x29f   : > { %1544 = vst [vmem:[#allocation3 + $0x10] sm:$0xf] %v1543_v26  ;;  %1547 = vst [vmem:[#allocation3 + $0x14] sm:$0x1] %v1546_v27  ;;  %v1531_v31 = vsel %vm3115_vm10, %v1496_v21, %v1530_v8  ;;  %v1534_v32 = vsel %vm3074_vm6, %v1497_v22, %v1533_v13  ;;  %v1504_v45 = vor.u32 %v1502_v25, %v1501_v24  ;;  %v1505_v33 = vrot.slane %v1501_v24, 4 }
 0x2a0   : > { %1532 = vst [vmem:[#allocation3] sm:$0xf] %v1531_v31  ;;  %1535 = vst [vmem:[#allocation3 + $0x4] sm:$0x1] %v1534_v32  ;;  %v1549_v34 = vsel %vm3115_vm10, %v1520_v28, %v1548_v20  ;;  %v1552_v36 = vsel %vm3074_vm6, %v1521_v63, %v1551_v23  ;;  %v1957_v15 = vunpack.c.l.bf16 %v3222_v1  ;;  %v1955_v20 = vunpack.c.l.bf16 %v3224_v5 }
 0x2a1   : > { %1550 = vst [vmem:[#allocation3 + $0x18] sm:$0xf] %v1549_v34  ;;  %1553 = vst [vmem:[#allocation3 + $0x1c] sm:$0x1] %v1552_v36  ;;  %v1537_v37 = vsel %vm3115_vm10, %v1504_v45, %v1536_v29  ;;  %v1540_v38 = vsel %vm3074_vm6, %v1505_v33, %v1539_v30  ;;  %v1958_v23 = vunpack.c.h.bf16 %v3222_v1  ;;  %v1956_v27 = vunpack.c.h.bf16 %v3224_v5 }
 0x2a2   : > { %1538 = vst [vmem:[#allocation3 + $0x8] sm:$0xf] %v1537_v37  ;;  %1541 = vst [vmem:[#allocation3 + $0xc] sm:$0x1] %v1540_v38 }
 0x2a6   : > { %v1562_v62 = vld [vmem:[#allocation3 + $0x10] sm:$0xe]  ;;  %v1563_v0 = vld [vmem:[#allocation3 + $0x14] sm:$0x1] }
 0x2a7   : > { %v1558_v39 = vld [vmem:[#allocation3] sm:$0xe]  ;;  %v1559_v16 = vld [vmem:[#allocation3 + $0x4] sm:$0x1]  ;;  %v2221_v3 = vrot.slane %v1562_v62, 9  ;;  %v1584_v44 = vrot.slane %v1563_v0, 5 }
 0x2a8   : > { %v2219_v41 = vrot.slane %v1558_v39, 9  ;;  %v1576_v42 = vrot.slane %v1559_v16, 5  ;;  %v2643_v48 = vld [vmem:[#allocation3 + $0x10] ss:$8 sps:$4 sm:$0xff]   ;;  %v1565_v60 = vld [vmem:[#allocation3 + $0x1c] sm:$0x1] }
 0x2a9   : > { %v2641_v43 = vld [vmem:[#allocation3] ss:$8 sps:$4 sm:$0xff]   ;;  %v1561_v49 = vld [vmem:[#allocation3 + $0xc] sm:$0x1]  ;;  %v1564_v59 = vld [vmem:[#allocation3 + $0x18] sm:$0xe]  ;;  %v1585_v6 = vsel %vm3140_vm13, %v2221_v3, %v1584_v44 }
 0x2aa   : > { %v1560_v46 = vld [vmem:[#allocation3 + $0x8] sm:$0xe]  ;;  %2467 = vmatprep.mubr.bf16.mxu0 %v2641_v43  ;;  %v1580_v51 = vrot.slane %v1561_v49, 5  ;;  %v1577_v40 = vsel %vm3140_vm13, %v2219_v41, %v1576_v42  ;;  %v2222_v9 = vrot.slane %v1564_v59, 9  ;;  %v1588_v2 = vrot.slane %v1565_v60, 5 }
 0x2ab   : > { %v2220_v50 = vrot.slane %v1560_v46, 9  ;;  %2468 = vmatmul.mubr.bf16.vlgmr.msra.gmra.mrb[16].mxu0 %v2643_v48 }
 0x2ac   : > { %2472 = vmatpush3.bf16.msra.mxu0 %v3212_v35  ;;  %v2647_v35 = vld [vmem:[%s3337_s5 + $0xa0] sm:$0xff]   ;;  %v1589_v4 = vsel %vm3140_vm13, %v2222_v9, %v1588_v2 }
 0x2ad   : > { %v1581_v53 = vsel %vm3140_vm13, %v2220_v50, %v1580_v51  ;;  %2473 = vmatprep.subr.bf16.mxu0 %v2644_v52  ;;  %v2274_v7 = vcombine.low %v1585_v6, %v1589_v4 }
 0x2ae   : > { %v2273_v54 = vcombine.low %v1577_v40, %v1581_v53 }
 0x2b0   : > { %2487 = vmatprep.mubr.bf16.mxu0 %v2273_v54  ;;  %2474 = vmatpush3.bf16.msra.mxu0 %v2644_v52 }
 0x2b1   : > { %2475 = vmatprep.subr.bf16.mxu0 %v2645_v55 }
 0x2b4   : > { %2476 = vmatpush3.bf16.msra.mxu0 %v2645_v55 }
 0x2b5   : > { %2477 = vmatprep.subr.bf16.mxu0 %v2646_v56 }
 0x2b8   : > { %2478 = vmatpush3.bf16.msra.mxu0 %v2646_v56 }
 0x2b9   : > { %2479 = vmatprep.subr.bf16.mxu0 %v2647_v35 }
 0x2bc   : > { %2480 = vmatpush3.bf16.msra.mxu0 %v2647_v35 }
 0x2bd   : > { %2481 = vmatprep.subr.bf16.mxu0 %v2648_v57 }
 0x2c0   : > { %2482 = vmatpush3.bf16.msra.mxu0 %v2648_v57 }
 0x2c1   : > { %2483 = vmatprep.subr.bf16.mxu0 %v2649_v58 }
 0x2c4   : > { %2484 = vmatpush3.bf16.msra.mxu0 %v2649_v58 }
 0x2c5   : > { %2485 = vmatprep.subr.bf16.mxu0 %v2650_v61 }
 0x2c8   : > { %2486 = vmatpush3.bf16.msra.mxu0 %v2650_v61 }
 0x2cb   : > { %2488 = vmatmul.mubr.bf16.vlgmr.msra.gmra.mrb[16].mxu0 %v2274_v7 }
 0x36f   : > { %v2449_v8 = vpop.f32.mrb[12].mxu1 }
 0x370   : > { %v1705_v10 = vpop.f32.mrb[13].mxu1 }
 0x371   : > { %v2450_v11 = vpop.f32.mrb[14].mxu1 }
 0x372   : > { %v1708_v12 = vpop.f32.mrb[15].mxu1 }
 0x39e   : > { %v2489_v13 = vpop.f32.mrb[16].mxu0 }
 0x39f   : > { %v2491_v14 = vadd.f32 %v2489_v13, %v2449_v8  ;;  %v1936_v17 = vpop.f32.mrb[17].mxu0 }
 0x3a0   : > { %v2492_v19 = vadd.f32 %v1936_v17, %v1705_v10  ;;  %v2490_v47 = vpop.f32.mrb[18].mxu0 }
 0x3a1   : > { %v1961_v21 = vadd.f32 %v2491_v14, %v1957_v15  ;;  %v2493_v22 = vadd.f32 %v2490_v47, %v2450_v11  ;;  %v1939_v24 = vpop.f32.mrb[19].mxu0 }
 0x3a2   : > { %v1959_v25 = vadd.f32 %v2492_v19, %v1955_v20  ;;  %v2494_v26 = vadd.f32 %v1939_v24, %v1708_v12 }
 0x3a3   : > { %v1972_v28 = vadd.f32 %v2283_v18, %v1961_v21  ;;  %v1962_v63 = vadd.f32 %v2493_v22, %v1958_v23 }
 0x3a4   : > { %v1970_v29 = vadd.f32 %v2283_v18, %v1959_v25  ;;  %v1960_v30 = vadd.f32 %v2494_v26, %v1956_v27 }
 0x3a5   : > { %v1973_v31 = vadd.f32 %v2283_v18, %v1962_v63  ;;  %v1976_v45 = vmax.f32 %v1972_v28, 0.0 }
 0x3a6   : > { %v1971_v32 = vadd.f32 %v2283_v18, %v1960_v30  ;;  %v1974_v34 = vmax.f32 %v1970_v29, 0.0 }
 0x3a7   : > { %v1977_v33 = vmax.f32 %v1973_v31, 0.0 }
 0x3a8   : > { %v1975_v1 = vmax.f32 %v1971_v32, 0.0 }
 0x3a9   : > { %v2308_v36 = vpack.c.bf16 %v1977_v33, %v1976_v45 }
 0x3aa   : > { %v2303_v5 = vpack.c.bf16 %v1975_v1, %v1974_v34 }
 0x3ab   : > { %2310 = vst [vmem:[%s387_s29 + $0x8] sm:$0xff] %v2308_v36  }
 0x3ac   : > { %2304 = vst [vmem:[%s387_s29] sm:$0xff] %v2303_v5  }
 0x3ad   : > { %2692 = shalt.err (!%p2689_p9)
}
 0x3ae   : > { %s2693_s21 = scalar_lea.hbm %s3286_s14, 256  ;;  %s2697_s23 = scalar_lea.hbm %s3339_s7, 512 }
 0x3af   : > { %p2694_p13 = scmp.ne.s32.totalorder %s3286_s14, %s2693_s21  ;;  %p2698_p6 = scmp.lt.u32.totalorder %s3286_s14, %s3339_s7 }
 0x3b0   : > { %p2699_p10 = scmp.lt.u32.totalorder %s2697_s23, %s2693_s21  ;;  %p2701_p0 = scmp.lt.u32.totalorder %s2693_s21, %s3286_s14 }
 0x3b1   : > { %p2695_p2 = pnand %p2694_p13, %p3362_p12 }
 0x3b2   : > { %p2700_p11 = por %p2699_p10, %p2698_p6 }
 0x3b3   : > { %p2696_p5 = pneg %p2695_p2 }
 0x3b4   : > { %p2702_p3 = por %p2701_p0, %p2700_p11 }
 0x3b6   : > { %p2703_p4 = pnand %p2702_p3, %p2696_p5 }
 0x3b8   : > { %2706 = shalt.err (!%p2703_p4)
}
 0x3b9   : > { %s2752_s8 = smov 64   ;;  %s2753_s15 = smov 4  }
 0x3ba   : > { %2511 = dma.vmem_to_hbm [thread:$0]  (%p3362_p12), %s3288_s17, 256, %s3286_s14, %s1987_s28, %s2752_s8, %s2752_s8, %s2753_s15  }
 0x3bb PF: > { %s2015_s18 = sand.u32 1, %s2733_s24   ;;  %p3363_p7 = scmp.ne.s32.totalorder %s3345_s13, 0 }
 0x3bc   : > { %s2016_s19 = scalar_lea.sflag [#allocation7], %s2015_s18 }
 0x3bd   : > { %p2518_p8 = pnand %p2083_p1, %p3363_p7 }
 0x3bf   : > { %2728 = dma.done.wait (!%p2518_p8), %s2016_s19, 256  }
 0x3c0   : > { %2730 = vsyncadd (!%p2518_p8), %s2016_s19, 4294967040  ;;  %p18_p9 = scmp.ge.s32.totalorder %s2819_s30, 4   ;;  %s3364_s24 = smov %s2737_s25 }
 0x3c1   : > { %s3365_s25 = smov %s2741_s26  ;;  %s3366_s26 = smov %s2831_s10 }
 0x3c2   : > { %s3367_s27 = smov %s2819_s30  ;;  %20 = sbr.rel (!%p18_p9) target bundleno = 4 (0x4), region = 138 }
 0x3c9   :  { %2021 = vsyncpa [#allocation6], 1 }
 0x3ca   :  { %2023 = vsyncpa [#allocation6 + $0x1], 1 }
 0x3cb   :  { %2024 = vsyncpa [#allocation7], 1 }
 0x3cc   :  { %2026 = vsyncpa [#allocation7 + $0x1], 1 }

</bundles_post_ra>
